<compile_context>
chip_gen: v5e
topology: v5e:2x2
jax: 0.10.0
libtpu: 0.0.40
codegen_flags: <defaults>
</compile_context>

<pallas_src>
import functools

import jax
import jax.numpy as jnp
from jax.experimental import pallas as pl
from jax.experimental.pallas import tpu as pltpu

LANE = 128
SUBLANE = 8


def _round_up(n, m):
    return ((n + m - 1) // m) * m


def mlp_kernel(x_ref, w1_ref, b1_ref, w2_ref, b2_ref, w3_ref, b3_ref, o_ref):
    """One batch tile: three MXU matmuls (bf16 in, f32 acc) + f32 bias/ReLU on the VPU."""
    wdt = w1_ref.dtype                       # bf16 weights
    x = x_ref[...].astype(wdt)               # f32 -> bf16 cast done in VMEM, in-kernel

    h = jnp.dot(x, w1_ref[...], preferred_element_type=jnp.float32) + b1_ref[...]
    h = jnp.maximum(h, 0.0)                  # relu (dropout = identity in eval mode)

    h = jnp.dot(h.astype(wdt), w2_ref[...], preferred_element_type=jnp.float32) + b2_ref[...]
    h = jnp.maximum(h, 0.0)

    h = jnp.dot(h.astype(wdt), w3_ref[...], preferred_element_type=jnp.float32) + b3_ref[...]
    o_ref[...] = jnp.maximum(h, 0.0).astype(o_ref.dtype)


@functools.partial(jax.jit, static_argnames=("out_dim", "tm", "weight_buffers"))
def mlp_forward(x, w1, b1, w2, b2, w3, b3, *, out_dim, tm=1024, weight_buffers=1):
    """x: [B, input_dim] f32 (raw, unpadded). Weights are the *prepared* (bf16) params."""
    B, K = x.shape
    _, H1 = w1.shape
    H2, N_pad = w3.shape

    # Batch tile: as large as requested (overhead-dominated kernel), multiple of 8
    # sublanes, but capped at ~ceil(B/2) so the grid keeps >= 2 steps (v7x has 2 TCs).
    B8 = _round_up(B, SUBLANE)
    two_step_cap = _round_up(pl.cdiv(B8, 2), SUBLANE)
    tm = int(_round_up(max(SUBLANE, min(tm, two_step_cap)), SUBLANE))
    grid = (pl.cdiv(B, tm),)        # ragged last block is masked on writeback

    def resident(arr):
        """Whole array, VMEM-resident across all grid steps; single-buffered if supported."""
        idx = lambda i: (0, 0)
        if weight_buffers == 1:
            try:
                return pl.BlockSpec(arr.shape, idx, pipeline_mode=pl.Buffered(1))
            except Exception:
                pass
        return pl.BlockSpec(arr.shape, idx)

    def nbytes(a):
        return a.size * a.dtype.itemsize

    cost = pl.CostEstimate(
        flops=2 * B * (K * H1 + H1 * H2 + H2 * N_pad),
        transcendentals=0,
        bytes_accessed=(nbytes(x) + nbytes(w1) + nbytes(b1) + nbytes(w2)
                        + nbytes(b2) + nbytes(w3) + nbytes(b3)
                        + B * N_pad * 4),
    )

    out = pl.pallas_call(
        mlp_kernel,
        out_shape=jax.ShapeDtypeStruct((B, N_pad), jnp.float32),
        grid=grid,
        in_specs=[
            pl.BlockSpec((tm, K), lambda i: (i, 0)),   # x: tiled over batch, raw f32
            resident(w1), resident(b1),
            resident(w2), resident(b2),
            resident(w3), resident(b3),
        ],
        out_specs=pl.BlockSpec((tm, N_pad), lambda i: (i, 0)),
        compiler_params=pltpu.CompilerParams(
            dimension_semantics=("parallel",),         # shard the batch axis across cores
        ),
        cost_estimate=cost,
    )(x, w1, b1, w2, b2, w3, b3)

    return out[:, :out_dim]


def init_linear(key, in_features, out_features):
    """Deterministic init mimicking nn.Linear's uniform(-1/sqrt(in), 1/sqrt(in))."""
    kw, kb = jax.random.split(key)
    bound = 1.0 / (in_features ** 0.5)
    w = jax.random.uniform(kw, (in_features, out_features), jnp.float32, -bound, bound)
    b = jax.random.uniform(kb, (1, out_features), jnp.float32, -bound, bound)
    return w, b


def prepare_params(w1, b1, w2, b2, w3, b3, weight_dtype=jnp.bfloat16):
    """Cast weights to bf16 (MXU input dtype); pad only fc3's output-feature axis to a
    lane (128) multiple so the final matmul/store stay lane-dense. Biases stay f32.
    No K padding: the kernel contracts directly against the unpadded [K, 256] w1.
    Note: bf16 weights deviate from the true f32 PyTorch params by ~bf16 epsilon."""
    n = w3.shape[1]
    n_pad = _round_up(n, LANE) - n
    w1p = w1.astype(weight_dtype)
    w2p = w2.astype(weight_dtype)
    w3p = jnp.pad(w3, ((0, 0), (0, n_pad))).astype(weight_dtype)
    b1p = b1.astype(jnp.float32)
    b2p = b2.astype(jnp.float32)
    b3p = jnp.pad(b3, ((0, 0), (0, n_pad))).astype(jnp.float32)
    return w1p, b1p, w2p, b2p, w3p, b3p


def reference_forward(x, w1, b1, w2, b2, w3, b3, *, out_dim):
    """Pure-JAX reference using the same prepared (bf16/padded) params."""
    wdt = w1.dtype
    h = jnp.maximum(jnp.dot(x.astype(wdt), w1, preferred_element_type=jnp.float32) + b1, 0.0)
    h = jnp.maximum(jnp.dot(h.astype(wdt), w2, preferred_element_type=jnp.float32) + b2, 0.0)
    h = jnp.maximum(jnp.dot(h.astype(wdt), w3, preferred_element_type=jnp.float32) + b3, 0.0)
    return h[:, :out_dim]


if __name__ == "__main__":
    key = jax.random.PRNGKey(0)
    k_x, k1, k2, k3 = jax.random.split(key, 4)

    batch = 256          # multi-step batch grid (tm capped to 128 here -> grid=(2,))
    input_dim = 32
    output_dim = 16

    x = jax.random.normal(k_x, (batch, input_dim), jnp.float32)
    w1, b1 = init_linear(k1, input_dim, 256)
    w2, b2 = init_linear(k2, 256, 128)
    w3, b3 = init_linear(k3, 128, output_dim)

    params = prepare_params(w1, b1, w2, b2, w3, b3)

    def run(weight_buffers):
        return jax.block_until_ready(
            mlp_forward(x, *params, out_dim=output_dim, weight_buffers=weight_buffers))

    try:
        out = run(1)       # single-buffered resident weights (pl.Buffered(1))
    except Exception:
        out = run(2)       # fallback: default double-buffering, identical math

    ref = reference_forward(x, *params, out_dim=output_dim)
    assert out.shape == (batch, output_dim)
    assert jnp.allclose(out, ref, atol=2e-3, rtol=2e-3), float(jnp.max(jnp.abs(out - ref)))

    print("KERNEL_OK")
</pallas_src>

<mosaic_0001>
module attributes {stable_mosaic.version = 11 : i64} {
  func.func @mlp_kernel(%arg0: i32, %arg1: memref<128x32xf32, #tpu.memory_space<vmem>>, %arg2: memref<32x256xbf16, #tpu.memory_space<vmem>>, %arg3: memref<1x256xf32, #tpu.memory_space<vmem>>, %arg4: memref<256x128xbf16, #tpu.memory_space<vmem>>, %arg5: memref<1x128xf32, #tpu.memory_space<vmem>>, %arg6: memref<128x128xbf16, #tpu.memory_space<vmem>>, %arg7: memref<1x128xf32, #tpu.memory_space<vmem>>, %arg8: memref<128x128xf32, #tpu.memory_space<vmem>>) attributes {dimension_semantics = [#tpu.dimension_semantics<parallel>], iteration_bounds = array<i64: 2>, scalar_prefetch = 0 : i64, scratch_operands = 0 : i64, tpu.core_type = #tpu.core_type<tc>, window_params = [{transform_indices = @transform_0, window_bounds = array<i64: 128, 32>}, {pipeline_mode = #tpu.pipeline_mode<synchronous>, transform_indices = @transform_1, window_bounds = array<i64: 32, 256>}, {pipeline_mode = #tpu.pipeline_mode<synchronous>, transform_indices = @transform_2, window_bounds = array<i64: 1, 256>}, {pipeline_mode = #tpu.pipeline_mode<synchronous>, transform_indices = @transform_3, window_bounds = array<i64: 256, 128>}, {pipeline_mode = #tpu.pipeline_mode<synchronous>, transform_indices = @transform_4, window_bounds = array<i64: 1, 128>}, {pipeline_mode = #tpu.pipeline_mode<synchronous>, transform_indices = @transform_5, window_bounds = array<i64: 128, 128>}, {pipeline_mode = #tpu.pipeline_mode<synchronous>, transform_indices = @transform_6, window_bounds = array<i64: 1, 128>}, {transform_indices = @transform_7, window_bounds = array<i64: 128, 128>}]} {
    %c0 = arith.constant 0 : index
    %c0_0 = arith.constant 0 : index
    %0 = vector.load %arg1[%c0, %c0_0] : memref<128x32xf32, #tpu.memory_space<vmem>>, vector<128x32xf32>
    %1 = arith.truncf %0 : vector<128x32xf32> to vector<128x32xbf16>
    %c0_1 = arith.constant 0 : index
    %c0_2 = arith.constant 0 : index
    %2 = vector.load %arg2[%c0_1, %c0_2] : memref<32x256xbf16, #tpu.memory_space<vmem>>, vector<32x256xbf16>
    %cst = arith.constant dense<0.000000e+00> : vector<128x256xf32>
    %3 = tpu.matmul %1, %2, %cst {dimension_numbers = #tpu.dot_dimension_numbers<[1], [0], [0], [1], [0, 0, 1, 1], [], []>} : vector<128x32xbf16>, vector<32x256xbf16>, vector<128x256xf32> -> vector<128x256xf32>
    %c0_3 = arith.constant 0 : index
    %c0_4 = arith.constant 0 : index
    %4 = vector.load %arg3[%c0_3, %c0_4] : memref<1x256xf32, #tpu.memory_space<vmem>>, vector<1x256xf32>
    %5 = vector.broadcast %4 : vector<1x256xf32> to vector<128x256xf32>
    %6 = arith.addf %3, %5 : vector<128x256xf32>
    %cst_5 = arith.constant 0.000000e+00 : f32
    %7 = vector.broadcast %cst_5 : f32 to vector<128x256xf32>
    %8 = arith.maximumf %6, %7 : vector<128x256xf32>
    %9 = arith.truncf %8 : vector<128x256xf32> to vector<128x256xbf16>
    %c0_6 = arith.constant 0 : index
    %c0_7 = arith.constant 0 : index
    %10 = vector.load %arg4[%c0_6, %c0_7] : memref<256x128xbf16, #tpu.memory_space<vmem>>, vector<256x128xbf16>
    %cst_8 = arith.constant dense<0.000000e+00> : vector<128x128xf32>
    %11 = tpu.matmul %9, %10, %cst_8 {dimension_numbers = #tpu.dot_dimension_numbers<[1], [0], [0], [1], [0, 0, 1, 1], [], []>} : vector<128x256xbf16>, vector<256x128xbf16>, vector<128x128xf32> -> vector<128x128xf32>
    %c0_9 = arith.constant 0 : index
    %c0_10 = arith.constant 0 : index
    %12 = vector.load %arg5[%c0_9, %c0_10] : memref<1x128xf32, #tpu.memory_space<vmem>>, vector<1x128xf32>
    %13 = vector.broadcast %12 : vector<1x128xf32> to vector<128x128xf32>
    %14 = arith.addf %11, %13 : vector<128x128xf32>
    %cst_11 = arith.constant 0.000000e+00 : f32
    %15 = vector.broadcast %cst_11 : f32 to vector<128x128xf32>
    %16 = arith.maximumf %14, %15 : vector<128x128xf32>
    %17 = arith.truncf %16 : vector<128x128xf32> to vector<128x128xbf16>
    %c0_12 = arith.constant 0 : index
    %c0_13 = arith.constant 0 : index
    %18 = vector.load %arg6[%c0_12, %c0_13] : memref<128x128xbf16, #tpu.memory_space<vmem>>, vector<128x128xbf16>
    %cst_14 = arith.constant dense<0.000000e+00> : vector<128x128xf32>
    %19 = tpu.matmul %17, %18, %cst_14 {dimension_numbers = #tpu.dot_dimension_numbers<[1], [0], [0], [1], [0, 0, 1, 1], [], []>} : vector<128x128xbf16>, vector<128x128xbf16>, vector<128x128xf32> -> vector<128x128xf32>
    %c0_15 = arith.constant 0 : index
    %c0_16 = arith.constant 0 : index
    %20 = vector.load %arg7[%c0_15, %c0_16] : memref<1x128xf32, #tpu.memory_space<vmem>>, vector<1x128xf32>
    %21 = vector.broadcast %20 : vector<1x128xf32> to vector<128x128xf32>
    %22 = arith.addf %19, %21 : vector<128x128xf32>
    %cst_17 = arith.constant 0.000000e+00 : f32
    %23 = vector.broadcast %cst_17 : f32 to vector<128x128xf32>
    %24 = arith.maximumf %22, %23 : vector<128x128xf32>
    %c0_18 = arith.constant 0 : index
    %c0_19 = arith.constant 0 : index
    %25 = vector.load %arg8[%c0_18, %c0_19] : memref<128x128xf32, #tpu.memory_space<vmem>>, vector<128x128xf32>
    tpu.vector_store %arg8[%c0_18, %c0_19], %24 {strides = array<i32>} : memref<128x128xf32, #tpu.memory_space<vmem>>, vector<128x128xf32>,
    return
  }
  func.func @transform_0(%arg0: i32) -> (i32, i32) {
    %c0_i32 = arith.constant 0 : i32
    %c0_i32_0 = arith.constant 0 : i32
    return %arg0, %c0_i32 : i32, i32
  }
  func.func @transform_1(%arg0: i32) -> (i32, i32) {
    %c0_i32 = arith.constant 0 : i32
    %c0_i32_0 = arith.constant 0 : i32
    %c0_i32_1 = arith.constant 0 : i32
    return %c0_i32, %c0_i32_0 : i32, i32
  }
  func.func @transform_2(%arg0: i32) -> (i32, i32) {
    %c0_i32 = arith.constant 0 : i32
    %c0_i32_0 = arith.constant 0 : i32
    %c0_i32_1 = arith.constant 0 : i32
    return %c0_i32, %c0_i32_0 : i32, i32
  }
  func.func @transform_3(%arg0: i32) -> (i32, i32) {
    %c0_i32 = arith.constant 0 : i32
    %c0_i32_0 = arith.constant 0 : i32
    %c0_i32_1 = arith.constant 0 : i32
    return %c0_i32, %c0_i32_0 : i32, i32
  }
  func.func @transform_4(%arg0: i32) -> (i32, i32) {
    %c0_i32 = arith.constant 0 : i32
    %c0_i32_0 = arith.constant 0 : i32
    %c0_i32_1 = arith.constant 0 : i32
    return %c0_i32, %c0_i32_0 : i32, i32
  }
  func.func @transform_5(%arg0: i32) -> (i32, i32) {
    %c0_i32 = arith.constant 0 : i32
    %c0_i32_0 = arith.constant 0 : i32
    %c0_i32_1 = arith.constant 0 : i32
    return %c0_i32, %c0_i32_0 : i32, i32
  }
  func.func @transform_6(%arg0: i32) -> (i32, i32) {
    %c0_i32 = arith.constant 0 : i32
    %c0_i32_0 = arith.constant 0 : i32
    %c0_i32_1 = arith.constant 0 : i32
    return %c0_i32, %c0_i32_0 : i32, i32
  }
  func.func @transform_7(%arg0: i32) -> (i32, i32) {
    %c0_i32 = arith.constant 0 : i32
    %c0_i32_0 = arith.constant 0 : i32
    return %arg0, %c0_i32 : i32, i32
  }
}

module attributes {stable_mosaic.version = 11 : i64} {
  func.func @mlp_kernel(%arg0: i32, %arg1: memref<128x32xf32, #tpu.memory_space<vmem>>, %arg2: memref<32x256xbf16, #tpu.memory_space<vmem>>, %arg3: memref<1x256xf32, #tpu.memory_space<vmem>>, %arg4: memref<256x128xbf16, #tpu.memory_space<vmem>>, %arg5: memref<1x128xf32, #tpu.memory_space<vmem>>, %arg6: memref<128x128xbf16, #tpu.memory_space<vmem>>, %arg7: memref<1x128xf32, #tpu.memory_space<vmem>>, %arg8: memref<128x128xf32, #tpu.memory_space<vmem>>) attributes {dimension_semantics = [#tpu.dimension_semantics<parallel>], iteration_bounds = array<i64: 2>, scalar_prefetch = 0 : i64, scratch_operands = 0 : i64, tpu.core_type = #tpu.core_type<tc>, window_params = [{transform_indices = @transform_0, window_bounds = array<i64: 128, 32>}, {pipeline_mode = #tpu.pipeline_mode<synchronous>, transform_indices = @transform_1, window_bounds = array<i64: 32, 256>}, {pipeline_mode = #tpu.pipeline_mode<synchronous>, transform_indices = @transform_2, window_bounds = array<i64: 1, 256>}, {pipeline_mode = #tpu.pipeline_mode<synchronous>, transform_indices = @transform_3, window_bounds = array<i64: 256, 128>}, {pipeline_mode = #tpu.pipeline_mode<synchronous>, transform_indices = @transform_4, window_bounds = array<i64: 1, 128>}, {pipeline_mode = #tpu.pipeline_mode<synchronous>, transform_indices = @transform_5, window_bounds = array<i64: 128, 128>}, {pipeline_mode = #tpu.pipeline_mode<synchronous>, transform_indices = @transform_6, window_bounds = array<i64: 1, 128>}, {transform_indices = @transform_7, window_bounds = array<i64: 128, 128>}]} {
    %c0 = arith.constant 0 : index
    %c0_0 = arith.constant 0 : index
    %0 = vector.load %arg1[%c0, %c0_0] : memref<128x32xf32, #tpu.memory_space<vmem>>, vector<128x32xf32>
    %1 = arith.truncf %0 : vector<128x32xf32> to vector<128x32xbf16>
    %c0_1 = arith.constant 0 : index
    %c0_2 = arith.constant 0 : index
    %2 = vector.load %arg2[%c0_1, %c0_2] : memref<32x256xbf16, #tpu.memory_space<vmem>>, vector<32x256xbf16>
    %cst = arith.constant dense<0.000000e+00> : vector<128x256xf32>
    %3 = tpu.matmul %1, %2, %cst {dimension_numbers = #tpu.dot_dimension_numbers<[1], [0], [0], [1], [0, 0, 1, 1], [], []>} : vector<128x32xbf16>, vector<32x256xbf16>, vector<128x256xf32> -> vector<128x256xf32>
    %c0_3 = arith.constant 0 : index
    %c0_4 = arith.constant 0 : index
    %4 = vector.load %arg3[%c0_3, %c0_4] : memref<1x256xf32, #tpu.memory_space<vmem>>, vector<1x256xf32>
    %5 = vector.broadcast %4 : vector<1x256xf32> to vector<128x256xf32>
    %6 = arith.addf %3, %5 : vector<128x256xf32>
    %cst_5 = arith.constant 0.000000e+00 : f32
    %7 = vector.broadcast %cst_5 : f32 to vector<128x256xf32>
    %8 = arith.maximumf %6, %7 : vector<128x256xf32>
    %9 = arith.truncf %8 : vector<128x256xf32> to vector<128x256xbf16>
    %c0_6 = arith.constant 0 : index
    %c0_7 = arith.constant 0 : index
    %10 = vector.load %arg4[%c0_6, %c0_7] : memref<256x128xbf16, #tpu.memory_space<vmem>>, vector<256x128xbf16>
    %cst_8 = arith.constant dense<0.000000e+00> : vector<128x128xf32>
    %11 = tpu.matmul %9, %10, %cst_8 {dimension_numbers = #tpu.dot_dimension_numbers<[1], [0], [0], [1], [0, 0, 1, 1], [], []>} : vector<128x256xbf16>, vector<256x128xbf16>, vector<128x128xf32> -> vector<128x128xf32>
    %c0_9 = arith.constant 0 : index
    %c0_10 = arith.constant 0 : index
    %12 = vector.load %arg5[%c0_9, %c0_10] : memref<1x128xf32, #tpu.memory_space<vmem>>, vector<1x128xf32>
    %13 = vector.broadcast %12 : vector<1x128xf32> to vector<128x128xf32>
    %14 = arith.addf %11, %13 : vector<128x128xf32>
    %cst_11 = arith.constant 0.000000e+00 : f32
    %15 = vector.broadcast %cst_11 : f32 to vector<128x128xf32>
    %16 = arith.maximumf %14, %15 : vector<128x128xf32>
    %17 = arith.truncf %16 : vector<128x128xf32> to vector<128x128xbf16>
    %c0_12 = arith.constant 0 : index
    %c0_13 = arith.constant 0 : index
    %18 = vector.load %arg6[%c0_12, %c0_13] : memref<128x128xbf16, #tpu.memory_space<vmem>>, vector<128x128xbf16>
    %cst_14 = arith.constant dense<0.000000e+00> : vector<128x128xf32>
    %19 = tpu.matmul %17, %18, %cst_14 {dimension_numbers = #tpu.dot_dimension_numbers<[1], [0], [0], [1], [0, 0, 1, 1], [], []>} : vector<128x128xbf16>, vector<128x128xbf16>, vector<128x128xf32> -> vector<128x128xf32>
    %c0_15 = arith.constant 0 : index
    %c0_16 = arith.constant 0 : index
    %20 = vector.load %arg7[%c0_15, %c0_16] : memref<1x128xf32, #tpu.memory_space<vmem>>, vector<1x128xf32>
    %21 = vector.broadcast %20 : vector<1x128xf32> to vector<128x128xf32>
    %22 = arith.addf %19, %21 : vector<128x128xf32>
    %cst_17 = arith.constant 0.000000e+00 : f32
    %23 = vector.broadcast %cst_17 : f32 to vector<128x128xf32>
    %24 = arith.maximumf %22, %23 : vector<128x128xf32>
    %c0_18 = arith.constant 0 : index
    %c0_19 = arith.constant 0 : index
    %25 = vector.load %arg8[%c0_18, %c0_19] : memref<128x128xf32, #tpu.memory_space<vmem>>, vector<128x128xf32>
    tpu.vector_store %arg8[%c0_18, %c0_19], %24 {strides = array<i32>} : memref<128x128xf32, #tpu.memory_space<vmem>>, vector<128x128xf32>,
    return
  }
  func.func @transform_0(%arg0: i32) -> (i32, i32) {
    %c0_i32 = arith.constant 0 : i32
    %c0_i32_0 = arith.constant 0 : i32
    return %arg0, %c0_i32 : i32, i32
  }
  func.func @transform_1(%arg0: i32) -> (i32, i32) {
    %c0_i32 = arith.constant 0 : i32
    %c0_i32_0 = arith.constant 0 : i32
    %c0_i32_1 = arith.constant 0 : i32
    return %c0_i32, %c0_i32_0 : i32, i32
  }
  func.func @transform_2(%arg0: i32) -> (i32, i32) {
    %c0_i32 = arith.constant 0 : i32
    %c0_i32_0 = arith.constant 0 : i32
    %c0_i32_1 = arith.constant 0 : i32
    return %c0_i32, %c0_i32_0 : i32, i32
  }
  func.func @transform_3(%arg0: i32) -> (i32, i32) {
    %c0_i32 = arith.constant 0 : i32
    %c0_i32_0 = arith.constant 0 : i32
    %c0_i32_1 = arith.constant 0 : i32
    return %c0_i32, %c0_i32_0 : i32, i32
  }
  func.func @transform_4(%arg0: i32) -> (i32, i32) {
    %c0_i32 = arith.constant 0 : i32
    %c0_i32_0 = arith.constant 0 : i32
    %c0_i32_1 = arith.constant 0 : i32
    return %c0_i32, %c0_i32_0 : i32, i32
  }
  func.func @transform_5(%arg0: i32) -> (i32, i32) {
    %c0_i32 = arith.constant 0 : i32
    %c0_i32_0 = arith.constant 0 : i32
    %c0_i32_1 = arith.constant 0 : i32
    return %c0_i32, %c0_i32_0 : i32, i32
  }
  func.func @transform_6(%arg0: i32) -> (i32, i32) {
    %c0_i32 = arith.constant 0 : i32
    %c0_i32_0 = arith.constant 0 : i32
    %c0_i32_1 = arith.constant 0 : i32
    return %c0_i32, %c0_i32_0 : i32, i32
  }
  func.func @transform_7(%arg0: i32) -> (i32, i32) {
    %c0_i32 = arith.constant 0 : i32
    %c0_i32_0 = arith.constant 0 : i32
    return %arg0, %c0_i32 : i32, i32
  }
}

</mosaic_0001>

<bundles_post_ra>
// kernel: mlp_forward.1
= control target key start
LH: loop header
LB: loop body
LE: loop exit
PB: predicated region body
PF: predicated region fallthrough
CT: control target
= control target key end

     0   :  { %s1198_s24 = smov 0   ;;  %s1451_s0 = inlined_call_operand.vmem [shape: f32[256,32], index: 0, kind: input, shape index: {}]   ;;  %s1452_s1 = inlined_call_operand.vmem [shape: bf16[32,256], index: 1, kind: input, shape index: {}]   ;;  %s1453_s2 = inlined_call_operand.vmem [shape: f32[1,256], index: 2, kind: input, shape index: {}]   ;;  %s1454_s3 = inlined_call_operand.vmem [shape: bf16[256,128], index: 3, kind: input, shape index: {}]   ;;  %s1455_s4 = inlined_call_operand.vmem [shape: f32[1,128], index: 4, kind: input, shape index: {}]   ;;  %s1456_s5 = inlined_call_operand.vmem [shape: bf16[128,128], index: 5, kind: input, shape index: {}]   ;;  %s1457_s6 = inlined_call_operand.vmem [shape: f32[1,128], index: 6, kind: input, shape index: {}]   ;;  %s1458_s7 = inlined_call_operand.vmem [shape: f32[256,128], index: 7, kind: output, shape index: {}]  }
   0x1 LB: > { %s967_s25 = sadd.s32 4294967295, %s1156_s24   ;;  %p971_p0 = scmp.ge.s32.totalorder %s1156_s24, 1  ;;  %s1156_s24 = sphi %s1198_s24, %s17_s24  }
   0x2   : > { %p238_p1 = scmp.lt.s32.totalorder %s1156_s24, 3 }
   0x4   : > { %p239_p2 = pnand %p971_p0, %p238_p1 }
   0x5   : > { %s972_s11 = sshll.u32 (!%p239_p2), %s967_s25, 4 }
   0x6   : > { %242 = sbr.rel (%p239_p2) target bundleno = 606 (0x25e), region = 48  ;;  %p271_p3 = scmp.lt.s32.totalorder (!%p239_p2), %s972_s11, 31 }
   0xb   : > { %v986_v0 = vld [vmem:[%s1452_s1 + $0x10] sm:$0xf]  ;;  %v1109_v1 = vld [vmem:[%s1452_s1 + $0x14] sm:$0xf0]  ;;  %v978_v2 = vld [vmem:[%s1452_s1] sm:$0xf] }
   0xc   : > { %v987_v3 = vor.u32 %v1109_v1, %v986_v0  ;;  %v1107_v4 = vld [vmem:[%s1452_s1 + $0x4] sm:$0xf0]  ;;  %v1108_v5 = vld [vmem:[%s1452_s1 + $0x14] sm:$0xf]  ;;  %v988_v6 = vld [vmem:[%s1452_s1 + $0x18] sm:$0xf0] }
   0xd   : > { %v979_v7 = vor.u32 %v1107_v4, %v978_v2  ;;  %s1460_s11 = smov (!%p271_p3, %s972_s11), 31  ;;  %v991_v8 = vor.u32 %v1108_v5, %v988_v6  ;;  %v1106_v9 = vld [vmem:[%s1452_s1 + $0x4] sm:$0xf]  ;;  %v980_v10 = vld [vmem:[%s1452_s1 + $0x8] sm:$0xf0]  ;;  %vm337_vm0 = vcmask 261120  }
   0xe   : > { %368 = vmatpush.bf16.msra.mxu0 %v987_v3  ;;  %1134 = vmatpush.bf16.msra.mxu1 %v987_v3  ;;  %s973_s16 = sshll.u32 %s1460_s11, 3  ;;  %v983_v16 = vor.u32 %v1106_v9, %v980_v10  ;;  %v1117_v29 = vld [vmem:[%s1454_s3 + $0x38] sm:$0xff]  ;;  %v1116_v31 = vld [vmem:[%s1454_s3 + $0x30] sm:$0xff]  ;;  %v1115_v34 = vld [vmem:[%s1454_s3 + $0x28] sm:$0xff] }
   0xf   : > { %1135 = vmatpush.bf16.msra.mxu2 %v987_v3  ;;  %1136 = vmatpush.bf16.msra.mxu3 %v987_v3  ;;  %s1238_s23 = scalar_lea.vmem %s1451_s0, %s973_s16  ;;  %v1114_v36 = vld [vmem:[%s1454_s3 + $0x20] sm:$0xff]  ;;  %v1113_v37 = vld [vmem:[%s1454_s3 + $0x18] sm:$0xff]  ;;  %v1112_v38 = vld [vmem:[%s1454_s3 + $0x10] sm:$0xff]  ;;  %s1415_s20 = scalar_lea.vmem %s1458_s7, %s973_s16 }
  0x10   : > { %v283_v11 = vld [vmem:[%s1238_s23] sm:$0xff]  ;;  %v284_v12 = vld [vmem:[%s1238_s23 + $0x8] sm:$0xff]  ;;  %v285_v18 = vld [vmem:[%s1238_s23 + $0x10] sm:$0xff] }
  0x11   : > { %v287_v13 = vld [vmem:[%s1238_s23 + $0x20] sm:$0xff]  ;;  %v299_v14 = vpack.c.bf16 %v284_v12, %v283_v11  ;;  %v288_v15 = vld [vmem:[%s1238_s23 + $0x28] sm:$0xff]  ;;  %v286_v19 = vld [vmem:[%s1238_s23 + $0x18] sm:$0xff] }
  0x12   : > { %369 = vmatpush.bf16.msra.mxu0 %v979_v7  ;;  %1137 = vmatpush.bf16.msra.mxu1 %v979_v7  ;;  %v301_v17 = vpack.c.bf16 %v288_v15, %v287_v13  ;;  %v289_v20 = vld [vmem:[%s1238_s23 + $0x30] sm:$0xff]  ;;  %v290_v21 = vld [vmem:[%s1238_s23 + $0x38] sm:$0xff]  ;;  %v300_v22 = vpack.c.bf16 %v286_v19, %v285_v18  ;;  %v291_v24 = vld [vmem:[%s1238_s23 + $0x40] sm:$0xff] }
  0x13   : > { %1138 = vmatpush.bf16.msra.mxu2 %v979_v7  ;;  %1139 = vmatpush.bf16.msra.mxu3 %v979_v7  ;;  %v302_v23 = vpack.c.bf16 %v290_v21, %v289_v20  ;;  %v292_v25 = vld [vmem:[%s1238_s23 + $0x48] sm:$0xff]  ;;  %v293_v27 = vld [vmem:[%s1238_s23 + $0x50] sm:$0xff]  ;;  %v294_v28 = vld [vmem:[%s1238_s23 + $0x58] sm:$0xff] }
  0x14   : > { %v303_v26 = vpack.c.bf16 %v292_v25, %v291_v24  ;;  %v304_v30 = vpack.c.bf16 %v294_v28, %v293_v27  ;;  %v295_v32 = vld [vmem:[%s1238_s23 + $0x60] sm:$0xff]  ;;  %v296_v33 = vld [vmem:[%s1238_s23 + $0x68] sm:$0xff]  ;;  %v297_v40 = vld [vmem:[%s1238_s23 + $0x70] sm:$0xff] }
  0x15   : > { %992 = vmatmul.msk.bf16.vlgmr.msra.gmra.mxu0 %vm337_vm0, %v299_v14  ;;  %994 = vmatmul.msk.bf16.vlgmr.msra.gmra.mxu1 %vm337_vm0, %v301_v17  ;;  %v305_v35 = vpack.c.bf16 %v296_v33, %v295_v32  ;;  %v1111_v39 = vld [vmem:[%s1454_s3 + $0x8] sm:$0xff]  ;;  %v298_v41 = vld [vmem:[%s1238_s23 + $0x78] sm:$0xff]  ;;  %v1110_v43 = vld [vmem:[%s1454_s3] sm:$0xff] }
  0x16   : > { %417 = vmatpush.bf16.msrb.mxu1 %v991_v8  ;;  %997 = vmatmul.msk.bf16.vlgmr.msra.gmra.mxu2 %vm337_vm0, %v304_v30  ;;  %v306_v42 = vpack.c.bf16 %v298_v41, %v297_v40  ;;  %v1125_v44 = vld [vmem:[%s1454_s3 + $0x78] sm:$0xff]  ;;  %v311_v45 = vld [vmem:[%s1453_s2] sm:$0x3]  ;;  %v1124_v49 = vld [vmem:[%s1454_s3 + $0x70] sm:$0xff] }
  0x17   : > { %640 = vmatpush.bf16.msrb.mxu2 %v1117_v29  ;;  %689 = vmatpush.bf16.msrb.mxu3 %v1125_v44  ;;  %v1299_v48 = vperm.slane %v311_v45, 0  ;;  %v1123_v51 = vld [vmem:[%s1454_s3 + $0x68] sm:$0xff]  ;;  %v1122_v57 = vld [vmem:[%s1454_s3 + $0x60] sm:$0xff]  ;;  %v1121_v59 = vld [vmem:[%s1454_s3 + $0x58] sm:$0xff] }
  0x18   : > { %999 = vmatmul.msk.bf16.vlgmr.msra.gmra.mxu3 %vm337_vm0, %v306_v42  ;;  %v1120_v62 = vld [vmem:[%s1454_s3 + $0x50] sm:$0xff]  ;;  %v1119_v0 = vld [vmem:[%s1454_s3 + $0x48] sm:$0xff]  ;;  %v1118_v6 = vld [vmem:[%s1454_s3 + $0x40] sm:$0xff] }
  0x1a   : > { %418 = vmatpush.bf16.msrb.mxu1 %v983_v16  ;;  %v1331_v16 = vperm.slane %v311_v45, 1 }
  0x1b   : > { %641 = vmatpush.bf16.msrb.mxu2 %v1116_v31  ;;  %690 = vmatpush.bf16.msrb.mxu3 %v1124_v49 }
  0x1f   : > { %642 = vmatpush.bf16.msrb.mxu2 %v1115_v34  ;;  %691 = vmatpush.bf16.msrb.mxu3 %v1123_v51 }
  0x23   : > { %643 = vmatpush.bf16.msrb.mxu2 %v1114_v36  ;;  %692 = vmatpush.bf16.msrb.mxu3 %v1122_v57 }
  0x25   : > { %993 = vmatmul.msk.bf16.gmra.mxu0 %vm337_vm0, %v300_v22  ;;  %995 = vmatmul.msk.bf16.gmra.mxu1 %vm337_vm0, %v302_v23 }
  0x26   : > { %998 = vmatmul.msk.bf16.gmra.mxu2 %vm337_vm0, %v305_v35 }
  0x27   : > { %644 = vmatpush.bf16.msrb.mxu2 %v1113_v37  ;;  %693 = vmatpush.bf16.msrb.mxu3 %v1121_v59 }
  0x2b   : > { %645 = vmatpush.bf16.msrb.mxu2 %v1112_v38  ;;  %694 = vmatpush.bf16.msrb.mxu3 %v1120_v62 }
  0x2f   : > { %646 = vmatpush.bf16.msrb.mxu2 %v1111_v39  ;;  %695 = vmatpush.bf16.msrb.mxu3 %v1119_v0 }
  0x33   : > { %647 = vmatpush.bf16.msrb.mxu2 %v1110_v43  ;;  %696 = vmatpush.bf16.msrb.mxu3 %v1118_v6 }
  0x35   : > { %996 = vmatmul.msk.bf16.gmra.mxu1 %vm337_vm0, %v303_v26 }
  0x45   : > { %1000 = vmatmul.msk.bf16.vlgmr.msrb.gmra.mxu1 %vm337_vm0, %v299_v14 }
  0x55   : > { %1001 = vmatmul.msk.bf16.gmra.mxu1 %vm337_vm0, %v300_v22 }
  0x65   : > { %1002 = vmatmul.msk.bf16.gmra.mxu1 %vm337_vm0, %v301_v17 }
  0x75   : > { %1003 = vmatmul.msk.bf16.gmra.mxu1 %vm337_vm0, %v302_v23 }
  0x85   : > { %1004 = vmatmul.msk.bf16.gmra.mxu1 %vm337_vm0, %v303_v26 }
  0x92   : > { %v371_v46 = vpop.f32.mrf.mxu0  ;;  %v381_v47 = vpop.f32.mrf.mxu1 }
  0x93   : > { %v372_v50 = vadd.f32 %v371_v46, %v1299_v48  ;;  %v382_v10 = vadd.f32 %v381_v47, %v1299_v48 }
  0x95   : > { %1005 = vmatmul.msk.bf16.gmra.mxu1 %vm337_vm0, %v304_v30  ;;  %v460_v53 = vmax.f32 %v372_v50, 0.0  ;;  %v468_v13 = vmax.f32 %v382_v10, 0.0 }
  0x99   : > { %v396_v38 = vpop.f32.mrf.mxu2 }
  0x9a   : > { %v373_v52 = vpop.f32.mrf.mxu0  ;;  %v383_v55 = vpop.f32.mrf.mxu1 }
  0x9b   : > { %v374_v54 = vadd.f32 %v373_v52, %v1299_v48  ;;  %v384_v9 = vadd.f32 %v383_v55, %v1299_v48 }
  0x9d   : > { %v462_v56 = vmax.f32 %v374_v54, 0.0  ;;  %v470_v11 = vmax.f32 %v384_v9, 0.0 }
  0x9f   : > { %v492_v58 = vpack.c.bf16 %v462_v56, %v460_v53  ;;  %v496_v14 = vpack.c.bf16 %v470_v11, %v468_v13 }
  0xa1   : > { %648 = vmatmul.bf16.vlgmr.msrb.gmra.mxu2 %v492_v58  ;;  %v398_v43 = vpop.f32.mrf.mxu2 }
  0xa2   : > { %v376_v60 = vpop.f32.mrf.mxu0  ;;  %v386_v61 = vpop.f32.mrf.mxu1  ;;  %v399_v44 = vadd.f32 %v398_v43, %v1299_v48 }
  0xa3   : > { %v377_v63 = vadd.f32 %v376_v60, %v1299_v48  ;;  %v387_v18 = vadd.f32 %v386_v61, %v1299_v48 }
  0xa4   : > { %v482_v47 = vmax.f32 %v399_v44, 0.0 }
  0xa5   : > { %1006 = vmatmul.msk.bf16.gmra.mxu1 %vm337_vm0, %v305_v35  ;;  %v464_v2 = vmax.f32 %v377_v63, 0.0  ;;  %v472_v23 = vmax.f32 %v387_v18, 0.0 }
  0xa9   : > { %v401_v54 = vpop.f32.mrf.mxu2 }
  0xaa   : > { %v378_v1 = vpop.f32.mrf.mxu0  ;;  %v388_v4 = vpop.f32.mrf.mxu1  ;;  %v402_v57 = vadd.f32 %v401_v54, %v1299_v48  ;;  %v1386_v54 = vld [vmem:[%s1455_s4] ss:$0 sm:$0xff] }
  0xab   : > { %v379_v3 = vadd.f32 %v378_v1, %v1299_v48  ;;  %v389_v17 = vadd.f32 %v388_v4, %v1299_v48 }
  0xac   : > { %v484_v61 = vmax.f32 %v402_v57, 0.0 }
  0xad   : > { %v466_v5 = vmax.f32 %v379_v3, 0.0  ;;  %v474_v20 = vmax.f32 %v389_v17, 0.0 }
  0xaf   : > { %v494_v7 = vpack.c.bf16 %v466_v5, %v464_v2  ;;  %v498_v26 = vpack.c.bf16 %v474_v20, %v472_v23  ;;  %v406_v5 = vpop.f32.mrf.mxu3 }
  0xb1   : > { %653 = vmatmul.bf16.gmra.mxu2 %v494_v7  ;;  %v403_v58 = vpop.f32.mrf.mxu2  ;;  %v407_v7 = vadd.f32 %v406_v5, %v1299_v48 }
  0xb2   : > { %v391_v8 = vpop.f32.mrf.mxu1  ;;  %v404_v59 = vadd.f32 %v403_v58, %v1299_v48 }
  0xb3   : > { %v392_v30 = vadd.f32 %v391_v8, %v1299_v48  ;;  %v488_v10 = vmax.f32 %v407_v7, 0.0 }
  0xb4   : > { %v486_v62 = vmax.f32 %v404_v59, 0.0 }
  0xb5   : > { %1007 = vmatmul.msk.bf16.gmra.mxu1 %vm337_vm0, %v306_v42  ;;  %v476_v35 = vmax.f32 %v392_v30, 0.0  ;;  %v397_v42 = vadd.f32 %v396_v38, %v1299_v48 }
  0xb6   : > { %v504_v3 = vpack.c.bf16 %v486_v62, %v484_v61 }
  0xb7   : > { %v480_v46 = vmax.f32 %v397_v42, 0.0  ;;  %v408_v8 = vpop.f32.mrf.mxu3 }
  0xb8   : > { %v409_v11 = vadd.f32 %v408_v8, %v1299_v48 }
  0xb9   : > { %v502_v53 = vpack.c.bf16 %v482_v47, %v480_v46 }
  0xba   : > { %v393_v12 = vpop.f32.mrf.mxu1 }
  0xbb   : > { %v394_v29 = vadd.f32 %v393_v12, %v1299_v48  ;;  %v1133_v48 = vld [vmem:[%s1456_s5 + $0x38] sm:$0xff] }
  0xbc   : > { %830 = vmatpush.bf16.msrb.mxu0 %v1133_v48 }
  0xbd   : > { %v478_v32 = vmax.f32 %v394_v29, 0.0  ;;  %v1131_v29 = vld [vmem:[%s1456_s5 + $0x28] sm:$0xff] }
  0xbf   : > { %v500_v39 = vpack.c.bf16 %v478_v32, %v476_v35 }
  0xc1   : > { %658 = vmatmul.bf16.gmra.mxu2 %v496_v14  ;;  %v490_v14 = vmax.f32 %v409_v11, 0.0 }
  0xc2   : > { %v420_v15 = vpop.f32.mrf.mxu1 }
  0xc3   : > { %v421_v19 = vadd.f32 %v420_v15, %v1331_v16  ;;  %v506_v18 = vpack.c.bf16 %v490_v14, %v488_v10 }
  0xc5   : > { %v461_v24 = vmax.f32 %v421_v19, 0.0 }
  0xca   : > { %v422_v21 = vpop.f32.mrf.mxu1 }
  0xcb   : > { %v423_v22 = vadd.f32 %v422_v21, %v1331_v16 }
  0xcd   : > { %v463_v25 = vmax.f32 %v423_v22, 0.0 }
  0xcf   : > { %v493_v27 = vpack.c.bf16 %v463_v25, %v461_v24 }
  0xd1   : > { %663 = vmatmul.bf16.gmra.mxu2 %v498_v26  ;;  %697 = vmatmul.bf16.vlgmr.msrb.gmra.mxu3 %v493_v27 }
  0xd2   : > { %v425_v28 = vpop.f32.mrf.mxu1 }
  0xd3   : > { %v426_v31 = vadd.f32 %v425_v28, %v1331_v16  ;;  %v1132_v28 = vld [vmem:[%s1456_s5 + $0x30] sm:$0xff] }
  0xd4   : > { %831 = vmatpush.bf16.msrb.mxu0 %v1132_v28 }
  0xd5   : > { %v465_v36 = vmax.f32 %v426_v31, 0.0 }
  0xd8   : > { %832 = vmatpush.bf16.msrb.mxu0 %v1131_v29 }
  0xda   : > { %v427_v33 = vpop.f32.mrf.mxu1 }
  0xdb   : > { %v428_v34 = vadd.f32 %v427_v33, %v1331_v16  ;;  %v1130_v33 = vld [vmem:[%s1456_s5 + $0x20] sm:$0xff] }
  0xdc   : > { %833 = vmatpush.bf16.msrb.mxu0 %v1130_v33 }
  0xdd   : > { %v467_v37 = vmax.f32 %v428_v34, 0.0 }
  0xdf   : > { %v495_v40 = vpack.c.bf16 %v467_v37, %v465_v36  ;;  %v1129_v37 = vld [vmem:[%s1456_s5 + $0x18] sm:$0xff] }
  0xe0   : > { %834 = vmatpush.bf16.msrb.mxu0 %v1129_v37 }
  0xe1   : > { %668 = vmatmul.bf16.gmra.mxu2 %v500_v39  ;;  %702 = vmatmul.bf16.gmra.mxu3 %v495_v40  ;;  %v1128_v40 = vld [vmem:[%s1456_s5 + $0x10] sm:$0xff] }
  0xe2   : > { %v430_v41 = vpop.f32.mrf.mxu1 }
  0xe3   : > { %v431_v45 = vadd.f32 %v430_v41, %v1331_v16  ;;  %v1127_v41 = vld [vmem:[%s1456_s5 + $0x8] sm:$0xff] }
  0xe4   : > { %835 = vmatpush.bf16.msrb.mxu0 %v1128_v40 }
  0xe5   : > { %v469_v51 = vmax.f32 %v431_v45, 0.0 }
  0xe8   : > { %836 = vmatpush.bf16.msrb.mxu0 %v1127_v41 }
  0xea   : > { %v432_v49 = vpop.f32.mrf.mxu1 }
  0xeb   : > { %v433_v50 = vadd.f32 %v432_v49, %v1331_v16  ;;  %v1126_v49 = vld [vmem:[%s1456_s5] sm:$0xff] }
  0xec   : > { %837 = vmatpush.bf16.msrb.mxu0 %v1126_v49 }
  0xed   : > { %v471_v52 = vmax.f32 %v433_v50, 0.0 }
  0xef   : > { %v497_v55 = vpack.c.bf16 %v471_v52, %v469_v51 }
  0xf1   : > { %673 = vmatmul.bf16.gmra.mxu2 %v502_v53  ;;  %707 = vmatmul.bf16.gmra.mxu3 %v497_v55 }
  0xf2   : > { %v435_v56 = vpop.f32.mrf.mxu1 }
  0xf3   : > { %v436_v60 = vadd.f32 %v435_v56, %v1331_v16 }
  0xf5   : > { %v473_v1 = vmax.f32 %v436_v60, 0.0 }
  0xfa   : > { %v437_v63 = vpop.f32.mrf.mxu1 }
  0xfb   : > { %v438_v0 = vadd.f32 %v437_v63, %v1331_v16 }
  0xfd   : > { %v475_v2 = vmax.f32 %v438_v0, 0.0 }
  0xff   : > { %v499_v4 = vpack.c.bf16 %v475_v2, %v473_v1 }
 0x101   : > { %678 = vmatmul.bf16.gmra.mxu2 %v504_v3  ;;  %712 = vmatmul.bf16.gmra.mxu3 %v499_v4 }
 0x102   : > { %v440_v6 = vpop.f32.mrf.mxu1 }
 0x103   : > { %v441_v9 = vadd.f32 %v440_v6, %v1331_v16 }
 0x105   : > { %v477_v15 = vmax.f32 %v441_v9, 0.0 }
 0x10a   : > { %v442_v12 = vpop.f32.mrf.mxu1 }
 0x10b   : > { %v443_v13 = vadd.f32 %v442_v12, %v1331_v16 }
 0x10d   : > { %v479_v17 = vmax.f32 %v443_v13, 0.0 }
 0x10f   : > { %v501_v19 = vpack.c.bf16 %v479_v17, %v477_v15 }
 0x111   : > { %683 = vmatmul.bf16.gmra.mxu2 %v506_v18  ;;  %717 = vmatmul.bf16.gmra.mxu3 %v501_v19 }
 0x112   : > { %v445_v20 = vpop.f32.mrf.mxu1 }
 0x113   : > { %v446_v21 = vadd.f32 %v445_v20, %v1331_v16 }
 0x115   : > { %v481_v24 = vmax.f32 %v446_v21, 0.0 }
 0x11a   : > { %v447_v22 = vpop.f32.mrf.mxu1 }
 0x11b   : > { %v448_v23 = vadd.f32 %v447_v22, %v1331_v16 }
 0x11d   : > { %v483_v25 = vmax.f32 %v448_v23, 0.0 }
 0x11f   : > { %v503_v26 = vpack.c.bf16 %v483_v25, %v481_v24 }
 0x121   : > { %722 = vmatmul.bf16.gmra.mxu3 %v503_v26 }
 0x122   : > { %v450_v27 = vpop.f32.mrf.mxu1 }
 0x123   : > { %v451_v30 = vadd.f32 %v450_v27, %v1331_v16 }
 0x124   : > { %v649_v39 = vpop.f32.mrf.mxu2 }
 0x125   : > { %v485_v34 = vmax.f32 %v451_v30, 0.0 }
 0x12a   : > { %v452_v31 = vpop.f32.mrf.mxu1 }
 0x12b   : > { %v453_v32 = vadd.f32 %v452_v31, %v1331_v16 }
 0x12c   : > { %v651_v47 = vpop.f32.mrf.mxu2 }
 0x12d   : > { %v487_v35 = vmax.f32 %v453_v32, 0.0  ;;  %v652_v55 = vadd.f32 %v1386_v54, %v651_v47 }
 0x12f   : > { %v505_v36 = vpack.c.bf16 %v487_v35, %v485_v34 }
 0x131   : > { %727 = vmatmul.bf16.gmra.mxu3 %v505_v36 }
 0x132   : > { %v455_v38 = vpop.f32.mrf.mxu1 }
 0x133   : > { %v456_v42 = vadd.f32 %v455_v38, %v1331_v16 }
 0x134   : > { %v654_v51 = vpop.f32.mrf.mxu2 }
 0x135   : > { %v489_v45 = vmax.f32 %v456_v42, 0.0  ;;  %v655_v1 = vadd.f32 %v1386_v54, %v654_v51 }
 0x13a   : > { %v457_v43 = vpop.f32.mrf.mxu1 }
 0x13b   : > { %v458_v44 = vadd.f32 %v457_v43, %v1331_v16  ;;  %v650_v16 = vadd.f32 %v1386_v54, %v649_v39 }
 0x13c   : > { %v656_v52 = vpop.f32.mrf.mxu2 }
 0x13d   : > { %v491_v46 = vmax.f32 %v458_v44, 0.0  ;;  %v657_v2 = vadd.f32 %v1386_v54, %v656_v52 }
 0x13f   : > { %v507_v50 = vpack.c.bf16 %v491_v46, %v489_v45 }
 0x141   : > { %732 = vmatmul.bf16.gmra.mxu3 %v507_v50 }
 0x144   : > { %v659_v57 = vpop.f32.mrf.mxu2 }
 0x145   : > { %v660_v11 = vadd.f32 %v1386_v54, %v659_v57 }
 0x14c   : > { %v661_v0 = vpop.f32.mrf.mxu2 }
 0x14d   : > { %v662_v13 = vadd.f32 %v1386_v54, %v661_v0 }
 0x154   : > { %v698_v53 = vpop.f32.mrf.mxu3  ;;  %v664_v8 = vpop.f32.mrf.mxu2 }
 0x155   : > { %v699_v56 = vadd.f32 %v698_v53, %v650_v16  ;;  %v665_v23 = vadd.f32 %v1386_v54, %v664_v8 }
 0x157   : > { %v738_v60 = vmax.f32 %v699_v56, 0.0 }
 0x15c   : > { %v700_v58 = vpop.f32.mrf.mxu3  ;;  %v666_v12 = vpop.f32.mrf.mxu2 }
 0x15d   : > { %v701_v59 = vadd.f32 %v700_v58, %v652_v55  ;;  %v667_v24 = vadd.f32 %v1386_v54, %v666_v12 }
 0x15f   : > { %v739_v61 = vmax.f32 %v701_v59, 0.0 }
 0x161   : > { %v754_v62 = vpack.c.bf16 %v739_v61, %v738_v60 }
 0x163   : > { %838 = vmatmul.bf16.vlgmr.msrb.gmra.mxu0 %v754_v62 }
 0x164   : > { %v703_v63 = vpop.f32.mrf.mxu3  ;;  %v669_v21 = vpop.f32.mrf.mxu2 }
 0x165   : > { %v704_v3 = vadd.f32 %v703_v63, %v655_v1  ;;  %v670_v33 = vadd.f32 %v1386_v54, %v669_v21 }
 0x167   : > { %v740_v6 = vmax.f32 %v704_v3, 0.0 }
 0x16c   : > { %v705_v4 = vpop.f32.mrf.mxu3  ;;  %v671_v27 = vpop.f32.mrf.mxu2 }
 0x16d   : > { %v706_v5 = vadd.f32 %v705_v4, %v657_v2  ;;  %v672_v34 = vadd.f32 %v1386_v54, %v671_v27 }
 0x16f   : > { %v741_v7 = vmax.f32 %v706_v5, 0.0 }
 0x171   : > { %v755_v9 = vpack.c.bf16 %v741_v7, %v740_v6 }
 0x173   : > { %843 = vmatmul.bf16.gmra.mxu0 %v755_v9 }
 0x174   : > { %v708_v10 = vpop.f32.mrf.mxu3  ;;  %v674_v32 = vpop.f32.mrf.mxu2 }
 0x175   : > { %v709_v14 = vadd.f32 %v708_v10, %v660_v11  ;;  %v675_v43 = vadd.f32 %v1386_v54, %v674_v32  ;;  %v1407_v10 = vld [vmem:[%s1457_s6] ss:$0 sm:$0xff] }
 0x177   : > { %v742_v18 = vmax.f32 %v709_v14, 0.0 }
 0x17c   : > { %v710_v15 = vpop.f32.mrf.mxu3  ;;  %v676_v40 = vpop.f32.mrf.mxu2 }
 0x17d   : > { %v711_v17 = vadd.f32 %v710_v15, %v662_v13  ;;  %v677_v45 = vadd.f32 %v1386_v54, %v676_v40 }
 0x17f   : > { %v743_v19 = vmax.f32 %v711_v17, 0.0 }
 0x181   : > { %v756_v20 = vpack.c.bf16 %v743_v19, %v742_v18 }
 0x183   : > { %848 = vmatmul.bf16.gmra.mxu0 %v756_v20 }
 0x184   : > { %v713_v22 = vpop.f32.mrf.mxu3  ;;  %v679_v44 = vpop.f32.mrf.mxu2 }
 0x185   : > { %v714_v25 = vadd.f32 %v713_v22, %v665_v23  ;;  %v680_v55 = vadd.f32 %v1386_v54, %v679_v44 }
 0x187   : > { %v744_v28 = vmax.f32 %v714_v25, 0.0 }
 0x18c   : > { %v715_v26 = vpop.f32.mrf.mxu3  ;;  %v681_v53 = vpop.f32.mrf.mxu2 }
 0x18d   : > { %v716_v48 = vadd.f32 %v715_v26, %v667_v24  ;;  %v682_v56 = vadd.f32 %v1386_v54, %v681_v53 }
 0x18f   : > { %v745_v29 = vmax.f32 %v716_v48, 0.0 }
 0x191   : > { %v757_v30 = vpack.c.bf16 %v745_v29, %v744_v28 }
 0x193   : > { %853 = vmatmul.bf16.gmra.mxu0 %v757_v30 }
 0x194   : > { %v718_v31 = vpop.f32.mrf.mxu3  ;;  %v684_v60 = vpop.f32.mrf.mxu2 }
 0x195   : > { %v719_v35 = vadd.f32 %v718_v31, %v670_v33  ;;  %v685_v2 = vadd.f32 %v1386_v54, %v684_v60 }
 0x197   : > { %v746_v38 = vmax.f32 %v719_v35, 0.0 }
 0x19c   : > { %v720_v36 = vpop.f32.mrf.mxu3  ;;  %v686_v1 = vpop.f32.mrf.mxu2 }
 0x19d   : > { %v721_v37 = vadd.f32 %v720_v36, %v672_v34  ;;  %v687_v3 = vadd.f32 %v1386_v54, %v686_v1 }
 0x19f   : > { %v747_v39 = vmax.f32 %v721_v37, 0.0 }
 0x1a1   : > { %v758_v41 = vpack.c.bf16 %v747_v39, %v746_v38 }
 0x1a3   : > { %858 = vmatmul.bf16.gmra.mxu0 %v758_v41 }
 0x1a4   : > { %v723_v42 = vpop.f32.mrf.mxu3 }
 0x1a5   : > { %v724_v46 = vadd.f32 %v723_v42, %v675_v43 }
 0x1a7   : > { %v748_v50 = vmax.f32 %v724_v46, 0.0 }
 0x1ac   : > { %v725_v47 = vpop.f32.mrf.mxu3 }
 0x1ad   : > { %v726_v49 = vadd.f32 %v725_v47, %v677_v45 }
 0x1af   : > { %v749_v51 = vmax.f32 %v726_v49, 0.0 }
 0x1b1   : > { %v759_v52 = vpack.c.bf16 %v749_v51, %v748_v50 }
 0x1b3   : > { %863 = vmatmul.bf16.gmra.mxu0 %v759_v52 }
 0x1b4   : > { %v728_v16 = vpop.f32.mrf.mxu3 }
 0x1b5   : > { %v729_v57 = vadd.f32 %v728_v16, %v680_v55 }
 0x1b7   : > { %v750_v61 = vmax.f32 %v729_v57, 0.0 }
 0x1bc   : > { %v730_v58 = vpop.f32.mrf.mxu3 }
 0x1bd   : > { %v731_v59 = vadd.f32 %v730_v58, %v682_v56 }
 0x1bf   : > { %v751_v62 = vmax.f32 %v731_v59, 0.0 }
 0x1c1   : > { %v760_v63 = vpack.c.bf16 %v751_v62, %v750_v61 }
 0x1c3   : > { %868 = vmatmul.bf16.gmra.mxu0 %v760_v63 }
 0x1c4   : > { %v733_v0 = vpop.f32.mrf.mxu3 }
 0x1c5   : > { %v734_v4 = vadd.f32 %v733_v0, %v685_v2 }
 0x1c7   : > { %v752_v7 = vmax.f32 %v734_v4, 0.0 }
 0x1cc   : > { %v735_v5 = vpop.f32.mrf.mxu3 }
 0x1cd   : > { %v736_v6 = vadd.f32 %v735_v5, %v687_v3 }
 0x1cf   : > { %v753_v8 = vmax.f32 %v736_v6, 0.0 }
 0x1d1   : > { %v761_v9 = vpack.c.bf16 %v753_v8, %v752_v7 }
 0x1d3   : > { %873 = vmatmul.bf16.gmra.mxu0 %v761_v9 }
 0x1e0   : > { %v839_v11 = vpop.f32.mrf.mxu0 }
 0x1e1   : > { %v840_v12 = vadd.f32 %v1407_v10, %v839_v11 }
 0x1e3   : > { %v879_v54 = vmax.f32 %v840_v12, 0.0 }
 0x1e5   : > { %895 = vst [vmem:[%s1415_s20] sm:$0xff] %v879_v54 }
 0x1e8   : > { %v841_v13 = vpop.f32.mrf.mxu0 }
 0x1e9   : > { %v842_v14 = vadd.f32 %v1407_v10, %v841_v13 }
 0x1eb   : > { %v880_v15 = vmax.f32 %v842_v14, 0.0 }
 0x1ed   : > { %896 = vst [vmem:[%s1415_s20 + $0x8] sm:$0xff] %v880_v15 }
 0x1f0   : > { %v844_v17 = vpop.f32.mrf.mxu0 }
 0x1f1   : > { %v845_v18 = vadd.f32 %v1407_v10, %v844_v17 }
 0x1f3   : > { %v881_v19 = vmax.f32 %v845_v18, 0.0 }
 0x1f5   : > { %897 = vst [vmem:[%s1415_s20 + $0x10] sm:$0xff] %v881_v19 }
 0x1f8   : > { %v846_v20 = vpop.f32.mrf.mxu0 }
 0x1f9   : > { %v847_v21 = vadd.f32 %v1407_v10, %v846_v20 }
 0x1fb   : > { %v882_v22 = vmax.f32 %v847_v21, 0.0 }
 0x1fd   : > { %898 = vst [vmem:[%s1415_s20 + $0x18] sm:$0xff] %v882_v22 }
 0x200   : > { %v849_v23 = vpop.f32.mrf.mxu0 }
 0x201   : > { %v850_v24 = vadd.f32 %v1407_v10, %v849_v23 }
 0x203   : > { %v883_v25 = vmax.f32 %v850_v24, 0.0 }
 0x205   : > { %899 = vst [vmem:[%s1415_s20 + $0x20] sm:$0xff] %v883_v25 }
 0x208   : > { %v851_v26 = vpop.f32.mrf.mxu0 }
 0x209   : > { %v852_v48 = vadd.f32 %v1407_v10, %v851_v26 }
 0x20b   : > { %v884_v27 = vmax.f32 %v852_v48, 0.0 }
 0x20d   : > { %900 = vst [vmem:[%s1415_s20 + $0x28] sm:$0xff] %v884_v27 }
 0x210   : > { %v854_v28 = vpop.f32.mrf.mxu0 }
 0x211   : > { %v855_v29 = vadd.f32 %v1407_v10, %v854_v28 }
 0x213   : > { %v885_v30 = vmax.f32 %v855_v29, 0.0 }
 0x215   : > { %901 = vst [vmem:[%s1415_s20 + $0x30] sm:$0xff] %v885_v30 }
 0x218   : > { %v856_v31 = vpop.f32.mrf.mxu0 }
 0x219   : > { %v857_v32 = vadd.f32 %v1407_v10, %v856_v31 }
 0x21b   : > { %v886_v33 = vmax.f32 %v857_v32, 0.0 }
 0x21d   : > { %902 = vst [vmem:[%s1415_s20 + $0x38] sm:$0xff] %v886_v33 }
 0x220   : > { %v859_v34 = vpop.f32.mrf.mxu0 }
 0x221   : > { %v860_v35 = vadd.f32 %v1407_v10, %v859_v34 }
 0x223   : > { %v887_v36 = vmax.f32 %v860_v35, 0.0 }
 0x225   : > { %903 = vst [vmem:[%s1415_s20 + $0x40] sm:$0xff] %v887_v36 }
 0x228   : > { %v861_v37 = vpop.f32.mrf.mxu0 }
 0x229   : > { %v862_v38 = vadd.f32 %v1407_v10, %v861_v37 }
 0x22b   : > { %v888_v39 = vmax.f32 %v862_v38, 0.0 }
 0x22d   : > { %904 = vst [vmem:[%s1415_s20 + $0x48] sm:$0xff] %v888_v39 }
 0x230   : > { %v864_v40 = vpop.f32.mrf.mxu0 }
 0x231   : > { %v865_v41 = vadd.f32 %v1407_v10, %v864_v40 }
 0x233   : > { %v889_v42 = vmax.f32 %v865_v41, 0.0 }
 0x235   : > { %905 = vst [vmem:[%s1415_s20 + $0x50] sm:$0xff] %v889_v42 }
 0x238   : > { %v866_v43 = vpop.f32.mrf.mxu0 }
 0x239   : > { %v867_v44 = vadd.f32 %v1407_v10, %v866_v43 }
 0x23b   : > { %v890_v45 = vmax.f32 %v867_v44, 0.0 }
 0x23d   : > { %906 = vst [vmem:[%s1415_s20 + $0x58] sm:$0xff] %v890_v45 }
 0x240   : > { %v869_v46 = vpop.f32.mrf.mxu0 }
 0x241   : > { %v870_v47 = vadd.f32 %v1407_v10, %v869_v46 }
 0x243   : > { %v891_v49 = vmax.f32 %v870_v47, 0.0 }
 0x245   : > { %907 = vst [vmem:[%s1415_s20 + $0x60] sm:$0xff] %v891_v49 }
 0x248   : > { %v871_v50 = vpop.f32.mrf.mxu0 }
 0x249   : > { %v872_v51 = vadd.f32 %v1407_v10, %v871_v50 }
 0x24b   : > { %v892_v52 = vmax.f32 %v872_v51, 0.0 }
 0x24d   : > { %908 = vst [vmem:[%s1415_s20 + $0x68] sm:$0xff] %v892_v52 }
 0x250   : > { %v874_v53 = vpop.f32.mrf.mxu0 }
 0x251   : > { %v875_v16 = vadd.f32 %v1407_v10, %v874_v53 }
 0x253   : > { %v893_v55 = vmax.f32 %v875_v16, 0.0 }
 0x255   : > { %909 = vst [vmem:[%s1415_s20 + $0x70] sm:$0xff] %v893_v55 }
 0x258   : > { %v876_v56 = vpop.f32.mrf.mxu0 }
 0x259   : > { %v877_v57 = vadd.f32 %v1407_v10, %v876_v56 }
 0x25b   : > { %v894_v58 = vmax.f32 %v877_v57, 0.0 }
 0x25d   : > { %910 = vst [vmem:[%s1415_s20 + $0x78] sm:$0xff] %v894_v58 }
 0x25e PF: > { %s17_s24 = sadd.s32 1, %s1156_s24  }
 0x25f   : > { %p14_p4 = scmp.ge.s32.totalorder %s17_s24, 4  }
 0x261   :  { %16 = sbr.rel (!%p14_p4) target bundleno = 1 (0x1), region = 78 }

// kernel: mlp_forward.1
= control target key start
LH: loop header
LB: loop body
LE: loop exit
PB: predicated region body
PF: predicated region fallthrough
CT: control target
= control target key end

     0   :  { %s1198_s24 = smov 0   ;;  %s1451_s0 = inlined_call_operand.vmem [shape: f32[256,32], index: 0, kind: input, shape index: {}]   ;;  %s1452_s1 = inlined_call_operand.vmem [shape: bf16[32,256], index: 1, kind: input, shape index: {}]   ;;  %s1453_s2 = inlined_call_operand.vmem [shape: f32[1,256], index: 2, kind: input, shape index: {}]   ;;  %s1454_s3 = inlined_call_operand.vmem [shape: bf16[256,128], index: 3, kind: input, shape index: {}]   ;;  %s1455_s4 = inlined_call_operand.vmem [shape: f32[1,128], index: 4, kind: input, shape index: {}]   ;;  %s1456_s5 = inlined_call_operand.vmem [shape: bf16[128,128], index: 5, kind: input, shape index: {}]   ;;  %s1457_s6 = inlined_call_operand.vmem [shape: f32[1,128], index: 6, kind: input, shape index: {}]   ;;  %s1458_s7 = inlined_call_operand.vmem [shape: f32[256,128], index: 7, kind: output, shape index: {}]  }
   0x1 LB: > { %s967_s25 = sadd.s32 4294967295, %s1156_s24   ;;  %p971_p0 = scmp.ge.s32.totalorder %s1156_s24, 1  ;;  %s1156_s24 = sphi %s1198_s24, %s17_s24  }
   0x2   : > { %p238_p1 = scmp.lt.s32.totalorder %s1156_s24, 3 }
   0x4   : > { %p239_p2 = pnand %p971_p0, %p238_p1 }
   0x5   : > { %s972_s11 = sshll.u32 (!%p239_p2), %s967_s25, 4 }
   0x6   : > { %242 = sbr.rel (%p239_p2) target bundleno = 606 (0x25e), region = 48  ;;  %p271_p3 = scmp.lt.s32.totalorder (!%p239_p2), %s972_s11, 31 }
   0xb   : > { %v986_v0 = vld [vmem:[%s1452_s1 + $0x10] sm:$0xf]  ;;  %v1109_v1 = vld [vmem:[%s1452_s1 + $0x14] sm:$0xf0]  ;;  %v978_v2 = vld [vmem:[%s1452_s1] sm:$0xf] }
   0xc   : > { %v987_v3 = vor.u32 %v1109_v1, %v986_v0  ;;  %v1107_v4 = vld [vmem:[%s1452_s1 + $0x4] sm:$0xf0]  ;;  %v1108_v5 = vld [vmem:[%s1452_s1 + $0x14] sm:$0xf]  ;;  %v988_v6 = vld [vmem:[%s1452_s1 + $0x18] sm:$0xf0] }
   0xd   : > { %v979_v7 = vor.u32 %v1107_v4, %v978_v2  ;;  %s1460_s11 = smov (!%p271_p3, %s972_s11), 31  ;;  %v991_v8 = vor.u32 %v1108_v5, %v988_v6  ;;  %v1106_v9 = vld [vmem:[%s1452_s1 + $0x4] sm:$0xf]  ;;  %v980_v10 = vld [vmem:[%s1452_s1 + $0x8] sm:$0xf0]  ;;  %vm337_vm0 = vcmask 261120  }
   0xe   : > { %368 = vmatpush.bf16.msra.mxu0 %v987_v3  ;;  %1134 = vmatpush.bf16.msra.mxu1 %v987_v3  ;;  %s973_s16 = sshll.u32 %s1460_s11, 3  ;;  %v983_v16 = vor.u32 %v1106_v9, %v980_v10  ;;  %v1117_v29 = vld [vmem:[%s1454_s3 + $0x38] sm:$0xff]  ;;  %v1116_v31 = vld [vmem:[%s1454_s3 + $0x30] sm:$0xff]  ;;  %v1115_v34 = vld [vmem:[%s1454_s3 + $0x28] sm:$0xff] }
   0xf   : > { %1135 = vmatpush.bf16.msra.mxu2 %v987_v3  ;;  %1136 = vmatpush.bf16.msra.mxu3 %v987_v3  ;;  %s1238_s23 = scalar_lea.vmem %s1451_s0, %s973_s16  ;;  %v1114_v36 = vld [vmem:[%s1454_s3 + $0x20] sm:$0xff]  ;;  %v1113_v37 = vld [vmem:[%s1454_s3 + $0x18] sm:$0xff]  ;;  %v1112_v38 = vld [vmem:[%s1454_s3 + $0x10] sm:$0xff]  ;;  %s1415_s20 = scalar_lea.vmem %s1458_s7, %s973_s16 }
  0x10   : > { %v283_v11 = vld [vmem:[%s1238_s23] sm:$0xff]  ;;  %v284_v12 = vld [vmem:[%s1238_s23 + $0x8] sm:$0xff]  ;;  %v285_v18 = vld [vmem:[%s1238_s23 + $0x10] sm:$0xff] }
  0x11   : > { %v287_v13 = vld [vmem:[%s1238_s23 + $0x20] sm:$0xff]  ;;  %v299_v14 = vpack.c.bf16 %v284_v12, %v283_v11  ;;  %v288_v15 = vld [vmem:[%s1238_s23 + $0x28] sm:$0xff]  ;;  %v286_v19 = vld [vmem:[%s1238_s23 + $0x18] sm:$0xff] }
  0x12   : > { %369 = vmatpush.bf16.msra.mxu0 %v979_v7  ;;  %1137 = vmatpush.bf16.msra.mxu1 %v979_v7  ;;  %v301_v17 = vpack.c.bf16 %v288_v15, %v287_v13  ;;  %v289_v20 = vld [vmem:[%s1238_s23 + $0x30] sm:$0xff]  ;;  %v290_v21 = vld [vmem:[%s1238_s23 + $0x38] sm:$0xff]  ;;  %v300_v22 = vpack.c.bf16 %v286_v19, %v285_v18  ;;  %v291_v24 = vld [vmem:[%s1238_s23 + $0x40] sm:$0xff] }
  0x13   : > { %1138 = vmatpush.bf16.msra.mxu2 %v979_v7  ;;  %1139 = vmatpush.bf16.msra.mxu3 %v979_v7  ;;  %v302_v23 = vpack.c.bf16 %v290_v21, %v289_v20  ;;  %v292_v25 = vld [vmem:[%s1238_s23 + $0x48] sm:$0xff]  ;;  %v293_v27 = vld [vmem:[%s1238_s23 + $0x50] sm:$0xff]  ;;  %v294_v28 = vld [vmem:[%s1238_s23 + $0x58] sm:$0xff] }
  0x14   : > { %v303_v26 = vpack.c.bf16 %v292_v25, %v291_v24  ;;  %v304_v30 = vpack.c.bf16 %v294_v28, %v293_v27  ;;  %v295_v32 = vld [vmem:[%s1238_s23 + $0x60] sm:$0xff]  ;;  %v296_v33 = vld [vmem:[%s1238_s23 + $0x68] sm:$0xff]  ;;  %v297_v40 = vld [vmem:[%s1238_s23 + $0x70] sm:$0xff] }
  0x15   : > { %992 = vmatmul.msk.bf16.vlgmr.msra.gmra.mxu0 %vm337_vm0, %v299_v14  ;;  %994 = vmatmul.msk.bf16.vlgmr.msra.gmra.mxu1 %vm337_vm0, %v301_v17  ;;  %v305_v35 = vpack.c.bf16 %v296_v33, %v295_v32  ;;  %v1111_v39 = vld [vmem:[%s1454_s3 + $0x8] sm:$0xff]  ;;  %v298_v41 = vld [vmem:[%s1238_s23 + $0x78] sm:$0xff]  ;;  %v1110_v43 = vld [vmem:[%s1454_s3] sm:$0xff] }
  0x16   : > { %417 = vmatpush.bf16.msrb.mxu1 %v991_v8  ;;  %997 = vmatmul.msk.bf16.vlgmr.msra.gmra.mxu2 %vm337_vm0, %v304_v30  ;;  %v306_v42 = vpack.c.bf16 %v298_v41, %v297_v40  ;;  %v1125_v44 = vld [vmem:[%s1454_s3 + $0x78] sm:$0xff]  ;;  %v311_v45 = vld [vmem:[%s1453_s2] sm:$0x3]  ;;  %v1124_v49 = vld [vmem:[%s1454_s3 + $0x70] sm:$0xff] }
  0x17   : > { %640 = vmatpush.bf16.msrb.mxu2 %v1117_v29  ;;  %689 = vmatpush.bf16.msrb.mxu3 %v1125_v44  ;;  %v1299_v48 = vperm.slane %v311_v45, 0  ;;  %v1123_v51 = vld [vmem:[%s1454_s3 + $0x68] sm:$0xff]  ;;  %v1122_v57 = vld [vmem:[%s1454_s3 + $0x60] sm:$0xff]  ;;  %v1121_v59 = vld [vmem:[%s1454_s3 + $0x58] sm:$0xff] }
  0x18   : > { %999 = vmatmul.msk.bf16.vlgmr.msra.gmra.mxu3 %vm337_vm0, %v306_v42  ;;  %v1120_v62 = vld [vmem:[%s1454_s3 + $0x50] sm:$0xff]  ;;  %v1119_v0 = vld [vmem:[%s1454_s3 + $0x48] sm:$0xff]  ;;  %v1118_v6 = vld [vmem:[%s1454_s3 + $0x40] sm:$0xff] }
  0x1a   : > { %418 = vmatpush.bf16.msrb.mxu1 %v983_v16  ;;  %v1331_v16 = vperm.slane %v311_v45, 1 }
  0x1b   : > { %641 = vmatpush.bf16.msrb.mxu2 %v1116_v31  ;;  %690 = vmatpush.bf16.msrb.mxu3 %v1124_v49 }
  0x1f   : > { %642 = vmatpush.bf16.msrb.mxu2 %v1115_v34  ;;  %691 = vmatpush.bf16.msrb.mxu3 %v1123_v51 }
  0x23   : > { %643 = vmatpush.bf16.msrb.mxu2 %v1114_v36  ;;  %692 = vmatpush.bf16.msrb.mxu3 %v1122_v57 }
  0x25   : > { %993 = vmatmul.msk.bf16.gmra.mxu0 %vm337_vm0, %v300_v22  ;;  %995 = vmatmul.msk.bf16.gmra.mxu1 %vm337_vm0, %v302_v23 }
  0x26   : > { %998 = vmatmul.msk.bf16.gmra.mxu2 %vm337_vm0, %v305_v35 }
  0x27   : > { %644 = vmatpush.bf16.msrb.mxu2 %v1113_v37  ;;  %693 = vmatpush.bf16.msrb.mxu3 %v1121_v59 }
  0x2b   : > { %645 = vmatpush.bf16.msrb.mxu2 %v1112_v38  ;;  %694 = vmatpush.bf16.msrb.mxu3 %v1120_v62 }
  0x2f   : > { %646 = vmatpush.bf16.msrb.mxu2 %v1111_v39  ;;  %695 = vmatpush.bf16.msrb.mxu3 %v1119_v0 }
  0x33   : > { %647 = vmatpush.bf16.msrb.mxu2 %v1110_v43  ;;  %696 = vmatpush.bf16.msrb.mxu3 %v1118_v6 }
  0x35   : > { %996 = vmatmul.msk.bf16.gmra.mxu1 %vm337_vm0, %v303_v26 }
  0x45   : > { %1000 = vmatmul.msk.bf16.vlgmr.msrb.gmra.mxu1 %vm337_vm0, %v299_v14 }
  0x55   : > { %1001 = vmatmul.msk.bf16.gmra.mxu1 %vm337_vm0, %v300_v22 }
  0x65   : > { %1002 = vmatmul.msk.bf16.gmra.mxu1 %vm337_vm0, %v301_v17 }
  0x75   : > { %1003 = vmatmul.msk.bf16.gmra.mxu1 %vm337_vm0, %v302_v23 }
  0x85   : > { %1004 = vmatmul.msk.bf16.gmra.mxu1 %vm337_vm0, %v303_v26 }
  0x92   : > { %v371_v46 = vpop.f32.mrf.mxu0  ;;  %v381_v47 = vpop.f32.mrf.mxu1 }
  0x93   : > { %v372_v50 = vadd.f32 %v371_v46, %v1299_v48  ;;  %v382_v10 = vadd.f32 %v381_v47, %v1299_v48 }
  0x95   : > { %1005 = vmatmul.msk.bf16.gmra.mxu1 %vm337_vm0, %v304_v30  ;;  %v460_v53 = vmax.f32 %v372_v50, 0.0  ;;  %v468_v13 = vmax.f32 %v382_v10, 0.0 }
  0x99   : > { %v396_v38 = vpop.f32.mrf.mxu2 }
  0x9a   : > { %v373_v52 = vpop.f32.mrf.mxu0  ;;  %v383_v55 = vpop.f32.mrf.mxu1 }
  0x9b   : > { %v374_v54 = vadd.f32 %v373_v52, %v1299_v48  ;;  %v384_v9 = vadd.f32 %v383_v55, %v1299_v48 }
  0x9d   : > { %v462_v56 = vmax.f32 %v374_v54, 0.0  ;;  %v470_v11 = vmax.f32 %v384_v9, 0.0 }
  0x9f   : > { %v492_v58 = vpack.c.bf16 %v462_v56, %v460_v53  ;;  %v496_v14 = vpack.c.bf16 %v470_v11, %v468_v13 }
  0xa1   : > { %648 = vmatmul.bf16.vlgmr.msrb.gmra.mxu2 %v492_v58  ;;  %v398_v43 = vpop.f32.mrf.mxu2 }
  0xa2   : > { %v376_v60 = vpop.f32.mrf.mxu0  ;;  %v386_v61 = vpop.f32.mrf.mxu1  ;;  %v399_v44 = vadd.f32 %v398_v43, %v1299_v48 }
  0xa3   : > { %v377_v63 = vadd.f32 %v376_v60, %v1299_v48  ;;  %v387_v18 = vadd.f32 %v386_v61, %v1299_v48 }
  0xa4   : > { %v482_v47 = vmax.f32 %v399_v44, 0.0 }
  0xa5   : > { %1006 = vmatmul.msk.bf16.gmra.mxu1 %vm337_vm0, %v305_v35  ;;  %v464_v2 = vmax.f32 %v377_v63, 0.0  ;;  %v472_v23 = vmax.f32 %v387_v18, 0.0 }
  0xa9   : > { %v401_v54 = vpop.f32.mrf.mxu2 }
  0xaa   : > { %v378_v1 = vpop.f32.mrf.mxu0  ;;  %v388_v4 = vpop.f32.mrf.mxu1  ;;  %v402_v57 = vadd.f32 %v401_v54, %v1299_v48  ;;  %v1386_v54 = vld [vmem:[%s1455_s4] ss:$0 sm:$0xff] }
  0xab   : > { %v379_v3 = vadd.f32 %v378_v1, %v1299_v48  ;;  %v389_v17 = vadd.f32 %v388_v4, %v1299_v48 }
  0xac   : > { %v484_v61 = vmax.f32 %v402_v57, 0.0 }
  0xad   : > { %v466_v5 = vmax.f32 %v379_v3, 0.0  ;;  %v474_v20 = vmax.f32 %v389_v17, 0.0 }
  0xaf   : > { %v494_v7 = vpack.c.bf16 %v466_v5, %v464_v2  ;;  %v498_v26 = vpack.c.bf16 %v474_v20, %v472_v23  ;;  %v406_v5 = vpop.f32.mrf.mxu3 }
  0xb1   : > { %653 = vmatmul.bf16.gmra.mxu2 %v494_v7  ;;  %v403_v58 = vpop.f32.mrf.mxu2  ;;  %v407_v7 = vadd.f32 %v406_v5, %v1299_v48 }
  0xb2   : > { %v391_v8 = vpop.f32.mrf.mxu1  ;;  %v404_v59 = vadd.f32 %v403_v58, %v1299_v48 }
  0xb3   : > { %v392_v30 = vadd.f32 %v391_v8, %v1299_v48  ;;  %v488_v10 = vmax.f32 %v407_v7, 0.0 }
  0xb4   : > { %v486_v62 = vmax.f32 %v404_v59, 0.0 }
  0xb5   : > { %1007 = vmatmul.msk.bf16.gmra.mxu1 %vm337_vm0, %v306_v42  ;;  %v476_v35 = vmax.f32 %v392_v30, 0.0  ;;  %v397_v42 = vadd.f32 %v396_v38, %v1299_v48 }
  0xb6   : > { %v504_v3 = vpack.c.bf16 %v486_v62, %v484_v61 }
  0xb7   : > { %v480_v46 = vmax.f32 %v397_v42, 0.0  ;;  %v408_v8 = vpop.f32.mrf.mxu3 }
  0xb8   : > { %v409_v11 = vadd.f32 %v408_v8, %v1299_v48 }
  0xb9   : > { %v502_v53 = vpack.c.bf16 %v482_v47, %v480_v46 }
  0xba   : > { %v393_v12 = vpop.f32.mrf.mxu1 }
  0xbb   : > { %v394_v29 = vadd.f32 %v393_v12, %v1299_v48  ;;  %v1133_v48 = vld [vmem:[%s1456_s5 + $0x38] sm:$0xff] }
  0xbc   : > { %830 = vmatpush.bf16.msrb.mxu0 %v1133_v48 }
  0xbd   : > { %v478_v32 = vmax.f32 %v394_v29, 0.0  ;;  %v1131_v29 = vld [vmem:[%s1456_s5 + $0x28] sm:$0xff] }
  0xbf   : > { %v500_v39 = vpack.c.bf16 %v478_v32, %v476_v35 }
  0xc1   : > { %658 = vmatmul.bf16.gmra.mxu2 %v496_v14  ;;  %v490_v14 = vmax.f32 %v409_v11, 0.0 }
  0xc2   : > { %v420_v15 = vpop.f32.mrf.mxu1 }
  0xc3   : > { %v421_v19 = vadd.f32 %v420_v15, %v1331_v16  ;;  %v506_v18 = vpack.c.bf16 %v490_v14, %v488_v10 }
  0xc5   : > { %v461_v24 = vmax.f32 %v421_v19, 0.0 }
  0xca   : > { %v422_v21 = vpop.f32.mrf.mxu1 }
  0xcb   : > { %v423_v22 = vadd.f32 %v422_v21, %v1331_v16 }
  0xcd   : > { %v463_v25 = vmax.f32 %v423_v22, 0.0 }
  0xcf   : > { %v493_v27 = vpack.c.bf16 %v463_v25, %v461_v24 }
  0xd1   : > { %663 = vmatmul.bf16.gmra.mxu2 %v498_v26  ;;  %697 = vmatmul.bf16.vlgmr.msrb.gmra.mxu3 %v493_v27 }
  0xd2   : > { %v425_v28 = vpop.f32.mrf.mxu1 }
  0xd3   : > { %v426_v31 = vadd.f32 %v425_v28, %v1331_v16  ;;  %v1132_v28 = vld [vmem:[%s1456_s5 + $0x30] sm:$0xff] }
  0xd4   : > { %831 = vmatpush.bf16.msrb.mxu0 %v1132_v28 }
  0xd5   : > { %v465_v36 = vmax.f32 %v426_v31, 0.0 }
  0xd8   : > { %832 = vmatpush.bf16.msrb.mxu0 %v1131_v29 }
  0xda   : > { %v427_v33 = vpop.f32.mrf.mxu1 }
  0xdb   : > { %v428_v34 = vadd.f32 %v427_v33, %v1331_v16  ;;  %v1130_v33 = vld [vmem:[%s1456_s5 + $0x20] sm:$0xff] }
  0xdc   : > { %833 = vmatpush.bf16.msrb.mxu0 %v1130_v33 }
  0xdd   : > { %v467_v37 = vmax.f32 %v428_v34, 0.0 }
  0xdf   : > { %v495_v40 = vpack.c.bf16 %v467_v37, %v465_v36  ;;  %v1129_v37 = vld [vmem:[%s1456_s5 + $0x18] sm:$0xff] }
  0xe0   : > { %834 = vmatpush.bf16.msrb.mxu0 %v1129_v37 }
  0xe1   : > { %668 = vmatmul.bf16.gmra.mxu2 %v500_v39  ;;  %702 = vmatmul.bf16.gmra.mxu3 %v495_v40  ;;  %v1128_v40 = vld [vmem:[%s1456_s5 + $0x10] sm:$0xff] }
  0xe2   : > { %v430_v41 = vpop.f32.mrf.mxu1 }
  0xe3   : > { %v431_v45 = vadd.f32 %v430_v41, %v1331_v16  ;;  %v1127_v41 = vld [vmem:[%s1456_s5 + $0x8] sm:$0xff] }
  0xe4   : > { %835 = vmatpush.bf16.msrb.mxu0 %v1128_v40 }
  0xe5   : > { %v469_v51 = vmax.f32 %v431_v45, 0.0 }
  0xe8   : > { %836 = vmatpush.bf16.msrb.mxu0 %v1127_v41 }
  0xea   : > { %v432_v49 = vpop.f32.mrf.mxu1 }
  0xeb   : > { %v433_v50 = vadd.f32 %v432_v49, %v1331_v16  ;;  %v1126_v49 = vld [vmem:[%s1456_s5] sm:$0xff] }
  0xec   : > { %837 = vmatpush.bf16.msrb.mxu0 %v1126_v49 }
  0xed   : > { %v471_v52 = vmax.f32 %v433_v50, 0.0 }
  0xef   : > { %v497_v55 = vpack.c.bf16 %v471_v52, %v469_v51 }
  0xf1   : > { %673 = vmatmul.bf16.gmra.mxu2 %v502_v53  ;;  %707 = vmatmul.bf16.gmra.mxu3 %v497_v55 }
  0xf2   : > { %v435_v56 = vpop.f32.mrf.mxu1 }
  0xf3   : > { %v436_v60 = vadd.f32 %v435_v56, %v1331_v16 }
  0xf5   : > { %v473_v1 = vmax.f32 %v436_v60, 0.0 }
  0xfa   : > { %v437_v63 = vpop.f32.mrf.mxu1 }
  0xfb   : > { %v438_v0 = vadd.f32 %v437_v63, %v1331_v16 }
  0xfd   : > { %v475_v2 = vmax.f32 %v438_v0, 0.0 }
  0xff   : > { %v499_v4 = vpack.c.bf16 %v475_v2, %v473_v1 }
 0x101   : > { %678 = vmatmul.bf16.gmra.mxu2 %v504_v3  ;;  %712 = vmatmul.bf16.gmra.mxu3 %v499_v4 }
 0x102   : > { %v440_v6 = vpop.f32.mrf.mxu1 }
 0x103   : > { %v441_v9 = vadd.f32 %v440_v6, %v1331_v16 }
 0x105   : > { %v477_v15 = vmax.f32 %v441_v9, 0.0 }
 0x10a   : > { %v442_v12 = vpop.f32.mrf.mxu1 }
 0x10b   : > { %v443_v13 = vadd.f32 %v442_v12, %v1331_v16 }
 0x10d   : > { %v479_v17 = vmax.f32 %v443_v13, 0.0 }
 0x10f   : > { %v501_v19 = vpack.c.bf16 %v479_v17, %v477_v15 }
 0x111   : > { %683 = vmatmul.bf16.gmra.mxu2 %v506_v18  ;;  %717 = vmatmul.bf16.gmra.mxu3 %v501_v19 }
 0x112   : > { %v445_v20 = vpop.f32.mrf.mxu1 }
 0x113   : > { %v446_v21 = vadd.f32 %v445_v20, %v1331_v16 }
 0x115   : > { %v481_v24 = vmax.f32 %v446_v21, 0.0 }
 0x11a   : > { %v447_v22 = vpop.f32.mrf.mxu1 }
 0x11b   : > { %v448_v23 = vadd.f32 %v447_v22, %v1331_v16 }
 0x11d   : > { %v483_v25 = vmax.f32 %v448_v23, 0.0 }
 0x11f   : > { %v503_v26 = vpack.c.bf16 %v483_v25, %v481_v24 }
 0x121   : > { %722 = vmatmul.bf16.gmra.mxu3 %v503_v26 }
 0x122   : > { %v450_v27 = vpop.f32.mrf.mxu1 }
 0x123   : > { %v451_v30 = vadd.f32 %v450_v27, %v1331_v16 }
 0x124   : > { %v649_v39 = vpop.f32.mrf.mxu2 }
 0x125   : > { %v485_v34 = vmax.f32 %v451_v30, 0.0 }
 0x12a   : > { %v452_v31 = vpop.f32.mrf.mxu1 }
 0x12b   : > { %v453_v32 = vadd.f32 %v452_v31, %v1331_v16 }
 0x12c   : > { %v651_v47 = vpop.f32.mrf.mxu2 }
 0x12d   : > { %v487_v35 = vmax.f32 %v453_v32, 0.0  ;;  %v652_v55 = vadd.f32 %v1386_v54, %v651_v47 }
 0x12f   : > { %v505_v36 = vpack.c.bf16 %v487_v35, %v485_v34 }
 0x131   : > { %727 = vmatmul.bf16.gmra.mxu3 %v505_v36 }
 0x132   : > { %v455_v38 = vpop.f32.mrf.mxu1 }
 0x133   : > { %v456_v42 = vadd.f32 %v455_v38, %v1331_v16 }
 0x134   : > { %v654_v51 = vpop.f32.mrf.mxu2 }
 0x135   : > { %v489_v45 = vmax.f32 %v456_v42, 0.0  ;;  %v655_v1 = vadd.f32 %v1386_v54, %v654_v51 }
 0x13a   : > { %v457_v43 = vpop.f32.mrf.mxu1 }
 0x13b   : > { %v458_v44 = vadd.f32 %v457_v43, %v1331_v16  ;;  %v650_v16 = vadd.f32 %v1386_v54, %v649_v39 }
 0x13c   : > { %v656_v52 = vpop.f32.mrf.mxu2 }
 0x13d   : > { %v491_v46 = vmax.f32 %v458_v44, 0.0  ;;  %v657_v2 = vadd.f32 %v1386_v54, %v656_v52 }
 0x13f   : > { %v507_v50 = vpack.c.bf16 %v491_v46, %v489_v45 }
 0x141   : > { %732 = vmatmul.bf16.gmra.mxu3 %v507_v50 }
 0x144   : > { %v659_v57 = vpop.f32.mrf.mxu2 }
 0x145   : > { %v660_v11 = vadd.f32 %v1386_v54, %v659_v57 }
 0x14c   : > { %v661_v0 = vpop.f32.mrf.mxu2 }
 0x14d   : > { %v662_v13 = vadd.f32 %v1386_v54, %v661_v0 }
 0x154   : > { %v698_v53 = vpop.f32.mrf.mxu3  ;;  %v664_v8 = vpop.f32.mrf.mxu2 }
 0x155   : > { %v699_v56 = vadd.f32 %v698_v53, %v650_v16  ;;  %v665_v23 = vadd.f32 %v1386_v54, %v664_v8 }
 0x157   : > { %v738_v60 = vmax.f32 %v699_v56, 0.0 }
 0x15c   : > { %v700_v58 = vpop.f32.mrf.mxu3  ;;  %v666_v12 = vpop.f32.mrf.mxu2 }
 0x15d   : > { %v701_v59 = vadd.f32 %v700_v58, %v652_v55  ;;  %v667_v24 = vadd.f32 %v1386_v54, %v666_v12 }
 0x15f   : > { %v739_v61 = vmax.f32 %v701_v59, 0.0 }
 0x161   : > { %v754_v62 = vpack.c.bf16 %v739_v61, %v738_v60 }
 0x163   : > { %838 = vmatmul.bf16.vlgmr.msrb.gmra.mxu0 %v754_v62 }
 0x164   : > { %v703_v63 = vpop.f32.mrf.mxu3  ;;  %v669_v21 = vpop.f32.mrf.mxu2 }
 0x165   : > { %v704_v3 = vadd.f32 %v703_v63, %v655_v1  ;;  %v670_v33 = vadd.f32 %v1386_v54, %v669_v21 }
 0x167   : > { %v740_v6 = vmax.f32 %v704_v3, 0.0 }
 0x16c   : > { %v705_v4 = vpop.f32.mrf.mxu3  ;;  %v671_v27 = vpop.f32.mrf.mxu2 }
 0x16d   : > { %v706_v5 = vadd.f32 %v705_v4, %v657_v2  ;;  %v672_v34 = vadd.f32 %v1386_v54, %v671_v27 }
 0x16f   : > { %v741_v7 = vmax.f32 %v706_v5, 0.0 }
 0x171   : > { %v755_v9 = vpack.c.bf16 %v741_v7, %v740_v6 }
 0x173   : > { %843 = vmatmul.bf16.gmra.mxu0 %v755_v9 }
 0x174   : > { %v708_v10 = vpop.f32.mrf.mxu3  ;;  %v674_v32 = vpop.f32.mrf.mxu2 }
 0x175   : > { %v709_v14 = vadd.f32 %v708_v10, %v660_v11  ;;  %v675_v43 = vadd.f32 %v1386_v54, %v674_v32  ;;  %v1407_v10 = vld [vmem:[%s1457_s6] ss:$0 sm:$0xff] }
 0x177   : > { %v742_v18 = vmax.f32 %v709_v14, 0.0 }
 0x17c   : > { %v710_v15 = vpop.f32.mrf.mxu3  ;;  %v676_v40 = vpop.f32.mrf.mxu2 }
 0x17d   : > { %v711_v17 = vadd.f32 %v710_v15, %v662_v13  ;;  %v677_v45 = vadd.f32 %v1386_v54, %v676_v40 }
 0x17f   : > { %v743_v19 = vmax.f32 %v711_v17, 0.0 }
 0x181   : > { %v756_v20 = vpack.c.bf16 %v743_v19, %v742_v18 }
 0x183   : > { %848 = vmatmul.bf16.gmra.mxu0 %v756_v20 }
 0x184   : > { %v713_v22 = vpop.f32.mrf.mxu3  ;;  %v679_v44 = vpop.f32.mrf.mxu2 }
 0x185   : > { %v714_v25 = vadd.f32 %v713_v22, %v665_v23  ;;  %v680_v55 = vadd.f32 %v1386_v54, %v679_v44 }
 0x187   : > { %v744_v28 = vmax.f32 %v714_v25, 0.0 }
 0x18c   : > { %v715_v26 = vpop.f32.mrf.mxu3  ;;  %v681_v53 = vpop.f32.mrf.mxu2 }
 0x18d   : > { %v716_v48 = vadd.f32 %v715_v26, %v667_v24  ;;  %v682_v56 = vadd.f32 %v1386_v54, %v681_v53 }
 0x18f   : > { %v745_v29 = vmax.f32 %v716_v48, 0.0 }
 0x191   : > { %v757_v30 = vpack.c.bf16 %v745_v29, %v744_v28 }
 0x193   : > { %853 = vmatmul.bf16.gmra.mxu0 %v757_v30 }
 0x194   : > { %v718_v31 = vpop.f32.mrf.mxu3  ;;  %v684_v60 = vpop.f32.mrf.mxu2 }
 0x195   : > { %v719_v35 = vadd.f32 %v718_v31, %v670_v33  ;;  %v685_v2 = vadd.f32 %v1386_v54, %v684_v60 }
 0x197   : > { %v746_v38 = vmax.f32 %v719_v35, 0.0 }
 0x19c   : > { %v720_v36 = vpop.f32.mrf.mxu3  ;;  %v686_v1 = vpop.f32.mrf.mxu2 }
 0x19d   : > { %v721_v37 = vadd.f32 %v720_v36, %v672_v34  ;;  %v687_v3 = vadd.f32 %v1386_v54, %v686_v1 }
 0x19f   : > { %v747_v39 = vmax.f32 %v721_v37, 0.0 }
 0x1a1   : > { %v758_v41 = vpack.c.bf16 %v747_v39, %v746_v38 }
 0x1a3   : > { %858 = vmatmul.bf16.gmra.mxu0 %v758_v41 }
 0x1a4   : > { %v723_v42 = vpop.f32.mrf.mxu3 }
 0x1a5   : > { %v724_v46 = vadd.f32 %v723_v42, %v675_v43 }
 0x1a7   : > { %v748_v50 = vmax.f32 %v724_v46, 0.0 }
 0x1ac   : > { %v725_v47 = vpop.f32.mrf.mxu3 }
 0x1ad   : > { %v726_v49 = vadd.f32 %v725_v47, %v677_v45 }
 0x1af   : > { %v749_v51 = vmax.f32 %v726_v49, 0.0 }
 0x1b1   : > { %v759_v52 = vpack.c.bf16 %v749_v51, %v748_v50 }
 0x1b3   : > { %863 = vmatmul.bf16.gmra.mxu0 %v759_v52 }
 0x1b4   : > { %v728_v16 = vpop.f32.mrf.mxu3 }
 0x1b5   : > { %v729_v57 = vadd.f32 %v728_v16, %v680_v55 }
 0x1b7   : > { %v750_v61 = vmax.f32 %v729_v57, 0.0 }
 0x1bc   : > { %v730_v58 = vpop.f32.mrf.mxu3 }
 0x1bd   : > { %v731_v59 = vadd.f32 %v730_v58, %v682_v56 }
 0x1bf   : > { %v751_v62 = vmax.f32 %v731_v59, 0.0 }
 0x1c1   : > { %v760_v63 = vpack.c.bf16 %v751_v62, %v750_v61 }
 0x1c3   : > { %868 = vmatmul.bf16.gmra.mxu0 %v760_v63 }
 0x1c4   : > { %v733_v0 = vpop.f32.mrf.mxu3 }
 0x1c5   : > { %v734_v4 = vadd.f32 %v733_v0, %v685_v2 }
 0x1c7   : > { %v752_v7 = vmax.f32 %v734_v4, 0.0 }
 0x1cc   : > { %v735_v5 = vpop.f32.mrf.mxu3 }
 0x1cd   : > { %v736_v6 = vadd.f32 %v735_v5, %v687_v3 }
 0x1cf   : > { %v753_v8 = vmax.f32 %v736_v6, 0.0 }
 0x1d1   : > { %v761_v9 = vpack.c.bf16 %v753_v8, %v752_v7 }
 0x1d3   : > { %873 = vmatmul.bf16.gmra.mxu0 %v761_v9 }
 0x1e0   : > { %v839_v11 = vpop.f32.mrf.mxu0 }
 0x1e1   : > { %v840_v12 = vadd.f32 %v1407_v10, %v839_v11 }
 0x1e3   : > { %v879_v54 = vmax.f32 %v840_v12, 0.0 }
 0x1e5   : > { %895 = vst [vmem:[%s1415_s20] sm:$0xff] %v879_v54 }
 0x1e8   : > { %v841_v13 = vpop.f32.mrf.mxu0 }
 0x1e9   : > { %v842_v14 = vadd.f32 %v1407_v10, %v841_v13 }
 0x1eb   : > { %v880_v15 = vmax.f32 %v842_v14, 0.0 }
 0x1ed   : > { %896 = vst [vmem:[%s1415_s20 + $0x8] sm:$0xff] %v880_v15 }
 0x1f0   : > { %v844_v17 = vpop.f32.mrf.mxu0 }
 0x1f1   : > { %v845_v18 = vadd.f32 %v1407_v10, %v844_v17 }
 0x1f3   : > { %v881_v19 = vmax.f32 %v845_v18, 0.0 }
 0x1f5   : > { %897 = vst [vmem:[%s1415_s20 + $0x10] sm:$0xff] %v881_v19 }
 0x1f8   : > { %v846_v20 = vpop.f32.mrf.mxu0 }
 0x1f9   : > { %v847_v21 = vadd.f32 %v1407_v10, %v846_v20 }
 0x1fb   : > { %v882_v22 = vmax.f32 %v847_v21, 0.0 }
 0x1fd   : > { %898 = vst [vmem:[%s1415_s20 + $0x18] sm:$0xff] %v882_v22 }
 0x200   : > { %v849_v23 = vpop.f32.mrf.mxu0 }
 0x201   : > { %v850_v24 = vadd.f32 %v1407_v10, %v849_v23 }
 0x203   : > { %v883_v25 = vmax.f32 %v850_v24, 0.0 }
 0x205   : > { %899 = vst [vmem:[%s1415_s20 + $0x20] sm:$0xff] %v883_v25 }
 0x208   : > { %v851_v26 = vpop.f32.mrf.mxu0 }
 0x209   : > { %v852_v48 = vadd.f32 %v1407_v10, %v851_v26 }
 0x20b   : > { %v884_v27 = vmax.f32 %v852_v48, 0.0 }
 0x20d   : > { %900 = vst [vmem:[%s1415_s20 + $0x28] sm:$0xff] %v884_v27 }
 0x210   : > { %v854_v28 = vpop.f32.mrf.mxu0 }
 0x211   : > { %v855_v29 = vadd.f32 %v1407_v10, %v854_v28 }
 0x213   : > { %v885_v30 = vmax.f32 %v855_v29, 0.0 }
 0x215   : > { %901 = vst [vmem:[%s1415_s20 + $0x30] sm:$0xff] %v885_v30 }
 0x218   : > { %v856_v31 = vpop.f32.mrf.mxu0 }
 0x219   : > { %v857_v32 = vadd.f32 %v1407_v10, %v856_v31 }
 0x21b   : > { %v886_v33 = vmax.f32 %v857_v32, 0.0 }
 0x21d   : > { %902 = vst [vmem:[%s1415_s20 + $0x38] sm:$0xff] %v886_v33 }
 0x220   : > { %v859_v34 = vpop.f32.mrf.mxu0 }
 0x221   : > { %v860_v35 = vadd.f32 %v1407_v10, %v859_v34 }
 0x223   : > { %v887_v36 = vmax.f32 %v860_v35, 0.0 }
 0x225   : > { %903 = vst [vmem:[%s1415_s20 + $0x40] sm:$0xff] %v887_v36 }
 0x228   : > { %v861_v37 = vpop.f32.mrf.mxu0 }
 0x229   : > { %v862_v38 = vadd.f32 %v1407_v10, %v861_v37 }
 0x22b   : > { %v888_v39 = vmax.f32 %v862_v38, 0.0 }
 0x22d   : > { %904 = vst [vmem:[%s1415_s20 + $0x48] sm:$0xff] %v888_v39 }
 0x230   : > { %v864_v40 = vpop.f32.mrf.mxu0 }
 0x231   : > { %v865_v41 = vadd.f32 %v1407_v10, %v864_v40 }
 0x233   : > { %v889_v42 = vmax.f32 %v865_v41, 0.0 }
 0x235   : > { %905 = vst [vmem:[%s1415_s20 + $0x50] sm:$0xff] %v889_v42 }
 0x238   : > { %v866_v43 = vpop.f32.mrf.mxu0 }
 0x239   : > { %v867_v44 = vadd.f32 %v1407_v10, %v866_v43 }
 0x23b   : > { %v890_v45 = vmax.f32 %v867_v44, 0.0 }
 0x23d   : > { %906 = vst [vmem:[%s1415_s20 + $0x58] sm:$0xff] %v890_v45 }
 0x240   : > { %v869_v46 = vpop.f32.mrf.mxu0 }
 0x241   : > { %v870_v47 = vadd.f32 %v1407_v10, %v869_v46 }
 0x243   : > { %v891_v49 = vmax.f32 %v870_v47, 0.0 }
 0x245   : > { %907 = vst [vmem:[%s1415_s20 + $0x60] sm:$0xff] %v891_v49 }
 0x248   : > { %v871_v50 = vpop.f32.mrf.mxu0 }
 0x249   : > { %v872_v51 = vadd.f32 %v1407_v10, %v871_v50 }
 0x24b   : > { %v892_v52 = vmax.f32 %v872_v51, 0.0 }
 0x24d   : > { %908 = vst [vmem:[%s1415_s20 + $0x68] sm:$0xff] %v892_v52 }
 0x250   : > { %v874_v53 = vpop.f32.mrf.mxu0 }
 0x251   : > { %v875_v16 = vadd.f32 %v1407_v10, %v874_v53 }
 0x253   : > { %v893_v55 = vmax.f32 %v875_v16, 0.0 }
 0x255   : > { %909 = vst [vmem:[%s1415_s20 + $0x70] sm:$0xff] %v893_v55 }
 0x258   : > { %v876_v56 = vpop.f32.mrf.mxu0 }
 0x259   : > { %v877_v57 = vadd.f32 %v1407_v10, %v876_v56 }
 0x25b   : > { %v894_v58 = vmax.f32 %v877_v57, 0.0 }
 0x25d   : > { %910 = vst [vmem:[%s1415_s20 + $0x78] sm:$0xff] %v894_v58 }
 0x25e PF: > { %s17_s24 = sadd.s32 1, %s1156_s24  }
 0x25f   : > { %p14_p4 = scmp.ge.s32.totalorder %s17_s24, 4  }
 0x261   :  { %16 = sbr.rel (!%p14_p4) target bundleno = 1 (0x1), region = 78 }

</bundles_post_ra>
